<compile_context>
chip_gen: v5e
topology: v5e:2x2
jax: 0.10.0
libtpu: 0.0.40
codegen_flags: <defaults>
</compile_context>

<pallas_src>
import numpy as np
import jax
import jax.numpy as jnp
from jax.experimental import pallas as pl
from jax.experimental.pallas import tpu as pltpu

NB_T = 6                     # nb_territories (module default)
HIDDEN = 16                  # hidden_size    (module default)
LANES = 128                  # padded lane width of the flattened 6x6 output
SLAB_LANES = 2 * LANES       # fused one-hot block is 256 lanes wide
N_OUT = NB_T * NB_T          # 36 real output lanes

# Row layout of the packed per-call parameter slab (48 x 256 f32, one DMA).
ROW_W_IN = 0                  # rows 0..5,  cols 0..15  : input_fc weight (6, 16)
ROW_B_IN = NB_T               # row  6,     cols 0..15  : input_fc bias
ROW_W_H = 8                   # rows 8..23, cols 0..11  : [torig_fc | tdest_fc] weight (16, 12)
ROW_B_H = ROW_W_H + HIDDEN    # row 24,     cols 0..11  : fused head bias
ROW_OH = 32                   # rows 32..43             : fused one-hot expansion (12, 256)
                              #   rows 32..37, lanes   0..127 : orig expansion (lane//6 == t)
                              #   rows 38..43, lanes 128..255 : dest expansion (lane%6 == t) * keep
ROW_FILL = 46                 # row 46,     lanes 0..127 : additive fill (0 / -1000 / -1e30)
SLAB_ROWS = 48


def attack_fortify_kernel(ppm_ref, slab_ref, out_ref):
    """ppm (bt, 6) f32; slab (48, 256) f32; out (bt, 128) flattened+padded softmax rows."""
    ppm = ppm_ref[...]                                               # (bt, 6)

    w_in = slab_ref[ROW_W_IN:ROW_W_IN + NB_T, 0:HIDDEN]              # (6, 16)
    b_in = slab_ref[ROW_B_IN:ROW_B_IN + 1, 0:HIDDEN]                 # (1, 16)
    w_h = slab_ref[ROW_W_H:ROW_W_H + HIDDEN, 0:2 * NB_T]             # (16, 12)
    b_h = slab_ref[ROW_B_H:ROW_B_H + 1, 0:2 * NB_T]                  # (1, 12)
    oh = slab_ref[ROW_OH:ROW_OH + 2 * NB_T, :]                       # (12, 256) 0/1 rows
    fill = slab_ref[ROW_FILL:ROW_FILL + 1, 0:LANES]                  # (1, 128)

    # x = tanh(input_fc(ppm)); fused heads = tanh([torig_fc | tdest_fc](x))
    x = jnp.tanh(jnp.dot(ppm, w_in, preferred_element_type=jnp.float32) + b_in)
    heads = jnp.tanh(jnp.dot(x, w_h, preferred_element_type=jnp.float32) + b_h)   # (bt, 12)

    # Fused one-hot lane expansion on the MXU (exact: weights are 0/1):
    #   lanes   0..127 : torig[b, lane//6]
    #   lanes 128..255 : tdest[b, lane%6] * keep[lane]   (legality folded in)
    expanded = jnp.dot(heads, oh, preferred_element_type=jnp.float32)             # (bt, 256)
    torig_rep = expanded[:, 0:LANES]                                              # (bt, 128)
    tdest_til = expanded[:, LANES:2 * LANES]                                      # (bt, 128)

    # Legal lane -> torig*tdest; illegal real lane -> -1000; pad lane -> -1e30.
    masked = torig_rep * tdest_til + fill                                         # (bt, 128)

    # Numerically stable softmax over the flattened (padded) lane dimension.
    m = jnp.max(masked, axis=1, keepdims=True)
    e = jnp.exp(masked - m)
    s = jnp.sum(e, axis=1, keepdims=True)
    out_ref[...] = (e * pl.reciprocal(s, approx=True)).astype(out_ref.dtype)


def init_params(key):
    k = jax.random.split(key, 6)
    w_in = jax.random.normal(k[0], (NB_T, HIDDEN), jnp.float32) / jnp.sqrt(NB_T)
    b_in = jax.random.normal(k[1], (HIDDEN,), jnp.float32) * 0.1
    w_o = jax.random.normal(k[2], (HIDDEN, NB_T), jnp.float32) / jnp.sqrt(HIDDEN)
    b_o = jax.random.normal(k[3], (NB_T,), jnp.float32) * 0.1
    w_d = jax.random.normal(k[4], (HIDDEN, NB_T), jnp.float32) / jnp.sqrt(HIDDEN)
    b_d = jax.random.normal(k[5], (NB_T,), jnp.float32) * 0.1
    return (w_in, b_in, w_o, b_o, w_d, b_d)


def pack_call_slab(params, possible_actions):
    """Pack weights + one-hot expansion rows (keep-mask folded in) + fill row into (48, 256)."""
    w_in, b_in, w_o, b_o, w_d, b_d = params
    slab = np.zeros((SLAB_ROWS, SLAB_LANES), np.float32)
    slab[ROW_W_IN:ROW_W_IN + NB_T, 0:HIDDEN] = np.asarray(w_in)
    slab[ROW_B_IN, 0:HIDDEN] = np.asarray(b_in).reshape(-1)
    slab[ROW_W_H:ROW_W_H + HIDDEN, 0:NB_T] = np.asarray(w_o)
    slab[ROW_W_H:ROW_W_H + HIDDEN, NB_T:2 * NB_T] = np.asarray(w_d)
    slab[ROW_B_H, 0:NB_T] = np.asarray(b_o).reshape(-1)
    slab[ROW_B_H, NB_T:2 * NB_T] = np.asarray(b_d).reshape(-1)

    keep = np.zeros((LANES,), np.float32)
    for a in possible_actions:
        idx = int(a[0]) * NB_T + int(a[1])
        assert 0 <= idx < N_OUT
        keep[idx] = 1.0

    lane = np.arange(LANES)
    valid = lane < N_OUT
    for t in range(NB_T):
        # orig expansion rows -> lanes 0..127
        slab[ROW_OH + t, 0:LANES] = (valid & ((lane // NB_T) == t)).astype(np.float32)
        # dest expansion rows with legality keep-mask folded in -> lanes 128..255
        slab[ROW_OH + NB_T + t, LANES:2 * LANES] = (
            (valid & ((lane % NB_T) == t)).astype(np.float32) * keep)

    # Additive fill: legal -> 0 (keep emb); illegal real -> -1000 (PyTorch ref);
    # pad lane (>=36) -> -1e30 so exp underflows to exactly 0.
    slab[ROW_FILL, 0:LANES] = np.where(
        keep == 1.0, 0.0, np.where(valid, -1000.0, -1e30)).astype(np.float32)
    return jnp.asarray(slab)


def _round_up(x, m):
    return ((x + m - 1) // m) * m


def _choose_block_rows(b):
    if b <= 32:
        # Latency path: tiny (>=8-row) block, no padding to a full 256-row tile.
        return _round_up(max(b, 1), 8)
    # Throughput path: big blocks to amortize per-step overhead, but keep the grid
    # >= 2 steps so both v7x TensorCores get work; 2048-row cap keeps intermediates
    # comfortably inside the 32 MiB scoped-VMEM default on all generations.
    return min(2048, _round_up(pl.cdiv(b, 2), 256))


def attack_fortify_forward(call_slab, player_presence_maps, *, block_rows=None,
                           out_dtype=jnp.float32):
    """Batched forward. Returns (B, NB_T*NB_T) action probabilities (B=1 for a 1-D input)."""
    ppm = jnp.asarray(player_presence_maps, jnp.float32)
    if ppm.ndim == 1:
        ppm = ppm.reshape(1, NB_T)
    b = ppm.shape[0]
    bt = block_rows if block_rows is not None else _choose_block_rows(b)
    b_pad = _round_up(b, bt)
    if b_pad != b:
        ppm = jnp.pad(ppm, ((0, b_pad - b), (0, 0)))

    out_bytes = LANES * jnp.dtype(out_dtype).itemsize
    cost = pl.CostEstimate(
        flops=int(b_pad) * 7500,                       # 2 small matmuls + (12,256) expansion + epilogue
        transcendentals=int(b_pad) * 157,              # 28 tanh + 128 exp + 1 rcp per row
        bytes_accessed=int(b_pad) * (NB_T * 4 + out_bytes) + SLAB_ROWS * SLAB_LANES * 4,
    )

    out = pl.pallas_call(
        attack_fortify_kernel,
        out_shape=jax.ShapeDtypeStruct((b_pad, LANES), out_dtype),
        grid_spec=pltpu.PrefetchScalarGridSpec(
            num_scalar_prefetch=0,
            grid=(b_pad // bt,),
            in_specs=[
                pl.BlockSpec((bt, NB_T), lambda i: (i, 0)),                 # presence maps
                pl.BlockSpec((SLAB_ROWS, SLAB_LANES), lambda i: (0, 0)),    # param slab
            ],
            out_specs=pl.BlockSpec((bt, LANES), lambda i: (i, 0)),
        ),
        compiler_params=pltpu.CompilerParams(dimension_semantics=("parallel",)),
        cost_estimate=cost,
    )(ppm, call_slab)

    return out[:b, :N_OUT]


def _reference_forward(params, possible_actions, ppm_batch):
    """Pure-JAX reference mirroring the PyTorch module (batched), validation only."""
    w_in, b_in, w_o, b_o, w_d, b_d = params
    x = jnp.tanh(ppm_batch @ w_in + b_in)
    torig = jnp.tanh(x @ w_o + b_o)
    tdest = jnp.tanh(x @ w_d + b_d)
    emb = torig[:, :, None] * tdest[:, None, :]            # (B, 6, 6)
    mask = jnp.zeros((NB_T, NB_T), jnp.float32)
    for a in possible_actions:
        mask = mask.at[a[0], a[1]].set(1.0)
    emb = jnp.where(mask[None] == 1.0, emb, -1000.0)
    return jax.nn.softmax(emb.reshape(ppm_batch.shape[0], -1), axis=1)


if __name__ == "__main__":
    key = jax.random.PRNGKey(0)
    pkey, xkey = jax.random.split(key)

    params = init_params(pkey)
    possible_actions = [(0, 1), (1, 3), (2, 0), (4, 5), (5, 2), (3, 4), (2, 5)]
    slab = pack_call_slab(params, possible_actions)

    B = 512                                              # auto-tiled: 2 blocks of 256 rows
    ppm_batch = jax.random.normal(xkey, (B, NB_T), jnp.float32)

    probs = attack_fortify_forward(slab, ppm_batch)
    probs = jax.block_until_ready(probs)

    ref = _reference_forward(params, possible_actions, ppm_batch)
    assert probs.shape == (B, N_OUT)
    # approx reciprocal + MXU accumulation order -> looser tolerance than exact path.
    assert jnp.allclose(jnp.sum(probs, axis=1), 1.0, atol=1e-3)
    assert jnp.max(jnp.abs(probs - ref)) < 2e-3, "mismatch vs pure-JAX reference"

    # Single-sample path matching the original module's signature (8-row latency block).
    p1 = attack_fortify_forward(slab, ppm_batch[0])
    p1 = jax.block_until_ready(p1)
    assert p1.shape == (1, N_OUT)
    assert jnp.max(jnp.abs(p1 - ref[0:1])) < 2e-3

    print("KERNEL_OK")
</pallas_src>

<mosaic_0001>
module attributes {stable_mosaic.version = 11 : i64} {
  func.func @attack_fortify_kernel(%arg0: i32, %arg1: memref<256x6xf32, #tpu.memory_space<vmem>>, %arg2: memref<48x256xf32, #tpu.memory_space<vmem>>, %arg3: memref<256x128xf32, #tpu.memory_space<vmem>>) attributes {dimension_semantics = [#tpu.dimension_semantics<parallel>], iteration_bounds = array<i64: 2>, scalar_prefetch = 0 : i64, scratch_operands = 0 : i64, tpu.core_type = #tpu.core_type<tc>, window_params = [{transform_indices = @transform_0, window_bounds = array<i64: 256, 6>}, {pipeline_mode = #tpu.pipeline_mode<synchronous>, transform_indices = @transform_1, window_bounds = array<i64: 48, 256>}, {transform_indices = @transform_2, window_bounds = array<i64: 256, 128>}]} {
    %c0 = arith.constant 0 : index
    %c0_0 = arith.constant 0 : index
    %0 = vector.load %arg1[%c0, %c0_0] : memref<256x6xf32, #tpu.memory_space<vmem>>, vector<256x6xf32>
    %c0_1 = arith.constant 0 : index
    %c0_2 = arith.constant 0 : index
    %1 = vector.load %arg2[%c0_1, %c0_2] : memref<48x256xf32, #tpu.memory_space<vmem>>, vector<6x16xf32>
    %c6 = arith.constant 6 : index
    %c0_3 = arith.constant 0 : index
    %2 = vector.load %arg2[%c6, %c0_3] : memref<48x256xf32, #tpu.memory_space<vmem>>, vector<1x16xf32>
    %c8 = arith.constant 8 : index
    %c0_4 = arith.constant 0 : index
    %3 = vector.load %arg2[%c8, %c0_4] : memref<48x256xf32, #tpu.memory_space<vmem>>, vector<16x12xf32>
    %c24 = arith.constant 24 : index
    %c0_5 = arith.constant 0 : index
    %4 = vector.load %arg2[%c24, %c0_5] : memref<48x256xf32, #tpu.memory_space<vmem>>, vector<1x12xf32>
    %c32 = arith.constant 32 : index
    %c0_6 = arith.constant 0 : index
    %5 = vector.load %arg2[%c32, %c0_6] : memref<48x256xf32, #tpu.memory_space<vmem>>, vector<12x256xf32>
    %c46 = arith.constant 46 : index
    %c0_7 = arith.constant 0 : index
    %6 = vector.load %arg2[%c46, %c0_7] : memref<48x256xf32, #tpu.memory_space<vmem>>, vector<1x128xf32>
    %cst = arith.constant dense<0.000000e+00> : vector<256x16xf32>
    %7 = tpu.matmul %0, %1, %cst {dimension_numbers = #tpu.dot_dimension_numbers<[1], [0], [0], [1], [0, 0, 1, 1], [], []>} : vector<256x6xf32>, vector<6x16xf32>, vector<256x16xf32> -> vector<256x16xf32>
    %8 = vector.broadcast %2 : vector<1x16xf32> to vector<256x16xf32>
    %9 = arith.addf %7, %8 : vector<256x16xf32>
    %10 = math.tanh %9 : vector<256x16xf32>
    %cst_8 = arith.constant dense<0.000000e+00> : vector<256x12xf32>
    %11 = tpu.matmul %10, %3, %cst_8 {dimension_numbers = #tpu.dot_dimension_numbers<[1], [0], [0], [1], [0, 0, 1, 1], [], []>} : vector<256x16xf32>, vector<16x12xf32>, vector<256x12xf32> -> vector<256x12xf32>
    %12 = vector.broadcast %4 : vector<1x12xf32> to vector<256x12xf32>
    %13 = arith.addf %11, %12 : vector<256x12xf32>
    %14 = math.tanh %13 : vector<256x12xf32>
    %cst_9 = arith.constant dense<0.000000e+00> : vector<256x256xf32>
    %15 = tpu.matmul %14, %5, %cst_9 {dimension_numbers = #tpu.dot_dimension_numbers<[1], [0], [0], [1], [0, 0, 1, 1], [], []>} : vector<256x12xf32>, vector<12x256xf32>, vector<256x256xf32> -> vector<256x256xf32>
    %16 = vector.extract_strided_slice %15 {offsets = [0, 0], sizes = [256, 128], strides = [1, 1]} : vector<256x256xf32> to vector<256x128xf32>
    %17 = vector.extract_strided_slice %15 {offsets = [0, 128], sizes = [256, 128], strides = [1, 1]} : vector<256x256xf32> to vector<256x128xf32>
    %18 = arith.mulf %16, %17 : vector<256x128xf32>
    %19 = vector.broadcast %6 : vector<1x128xf32> to vector<256x128xf32>
    %20 = arith.addf %18, %19 : vector<256x128xf32>
    %cst_10 = arith.constant dense<0xFF800000> : vector<256xf32>
    %21 = vector.multi_reduction <maximumf>, %20, %cst_10 [1] : vector<256x128xf32> to vector<256xf32>
    %22 = vector.shape_cast %21 : vector<256xf32> to vector<256x1xf32>
    %23 = vector.broadcast %22 : vector<256x1xf32> to vector<256x128xf32>
    %24 = arith.subf %20, %23 : vector<256x128xf32>
    %25 = math.exp %24 : vector<256x128xf32>
    %cst_11 = arith.constant dense<0.000000e+00> : vector<256xf32>
    %26 = vector.multi_reduction <add>, %25, %cst_11 [1] : vector<256x128xf32> to vector<256xf32>
    %27 = vector.shape_cast %26 : vector<256xf32> to vector<256x1xf32>
    %28 = tpu.reciprocal %27 {approx = true} : vector<256x1xf32> -> vector<256x1xf32>
    %29 = vector.broadcast %28 : vector<256x1xf32> to vector<256x128xf32>
    %30 = arith.mulf %25, %29 : vector<256x128xf32>
    %c0_12 = arith.constant 0 : index
    %c0_13 = arith.constant 0 : index
    %31 = vector.load %arg3[%c0_12, %c0_13] : memref<256x128xf32, #tpu.memory_space<vmem>>, vector<256x128xf32>
    tpu.vector_store %arg3[%c0_12, %c0_13], %30 {strides = array<i32>} : memref<256x128xf32, #tpu.memory_space<vmem>>, vector<256x128xf32>,
    return
  }
  func.func @transform_0(%arg0: i32) -> (i32, i32) {
    %c0_i32 = arith.constant 0 : i32
    %c0_i32_0 = arith.constant 0 : i32
    return %arg0, %c0_i32 : i32, i32
  }
  func.func @transform_1(%arg0: i32) -> (i32, i32) {
    %c0_i32 = arith.constant 0 : i32
    %c0_i32_0 = arith.constant 0 : i32
    %c0_i32_1 = arith.constant 0 : i32
    return %c0_i32, %c0_i32_0 : i32, i32
  }
  func.func @transform_2(%arg0: i32) -> (i32, i32) {
    %c0_i32 = arith.constant 0 : i32
    %c0_i32_0 = arith.constant 0 : i32
    return %arg0, %c0_i32 : i32, i32
  }
}

</mosaic_0001>

<bundles_post_ra>
// kernel: tpu_custom_call.1
= control target key start
LH: loop header
LB: loop body
LE: loop exit
PB: predicated region body
PF: predicated region fallthrough
CT: control target
= control target key end

     0   :  { %7 = vsyncpa [#allocation3], 0  ;;  %s2662_s0 = inlined_call_operand.vmem [shape: f32[512,6], index: 0, kind: input, shape index: {}]   ;;  %s2663_s1 = inlined_call_operand.vmem [shape: f32[48,256], index: 1, kind: input, shape index: {}]   ;;  %s2664_s2 = inlined_call_operand.hbm [shape: f32[512,128], index: 2, kind: output, shape index: {}]  }
   0x1   :  { %9 = vsyncpa [#allocation3 + $0x1], 0  ;;  %s1989_s9 = smov 0   ;;  %s1991_s10 = smov 0  }
   0x2   :  { %s1993_s11 = smov 0   ;;  %s1995_s12 = smov 0  }
   0x3 LB: > { %s2010_s13 = sadd.s32 4294967295, %s1970_s12   ;;  %s1467_s14 = sadd.s32 4294967294, %s1970_s12   ;;  %s1970_s12 = sphi %s1995_s12, %s2670_s12   ;;  %s1966_s11 = sphi %s1993_s11, %s2669_s11   ;;  %s1962_s10 = sphi %s1991_s10, %s2668_s10   ;;  %s1958_s9 = sphi %s1989_s9, %s2667_s9  }
   0x4   : > { %s2014_s15 = sadd.s32 1, %s1970_s12   ;;  %s69_s16 = sadd.s32 1, %s1966_s11 }
   0x5   : > { %s66_s17 = ssub.s32 %s1970_s12, %s2014_s15  ;;  %p79_p0 = scmp.ne.s32.totalorder %s1966_s11, %s1962_s10 }
   0x6   : > { %p67_p1 = scmp.eq.s32.totalorder %s66_s17, 0  ;;  %p80_p2 = scmp.eq.s32.totalorder %s2010_s13, 1 }
   0x7   : > { %p85_p3 = scmp.ne.s32.totalorder %s1962_s10, %s1958_s9  ;;  %p86_p4 = scmp.eq.s32.totalorder %s1467_s14, 1 }
   0x8   : > { %s2025_s18 = scalar_select %p67_p1, %s1966_s11, %s69_s16  }
   0x9   : > { %p2027_p5 = por %p80_p2, %p79_p0  ;;  %p2031_p6 = por %p86_p4, %p85_p3 }
   0xa   : > { %p1470_p7 = scmp.ge.s32.totalorder %s1970_s12, 1  ;;  %p116_p8 = scmp.lt.s32.totalorder %s1970_s12, 3 }
   0xc   : > { %p117_p9 = pnand %p1470_p7, %p116_p8 }
   0xd   : > { %s1472_s23 = sshll.u32 (!%p117_p9), %s2010_s13, 5  ;;  %s1610_s30 = sshll.u32 (!%p117_p9), %s2010_s13, 8 }
   0xe   : > { %120 = sbr.rel (%p117_p9) target bundleno = 934 (0x3a6), region = 28  ;;  %p139_p10 = scmp.lt.s32.totalorder (!%p117_p9), %s1472_s23, 63 }
   0xf   : > { %s1401_s5 = scalar_lea.hbm (!%p117_p9), %s2664_s2, %s1610_s30  ;;  %s1928_s21 = scalar_lea.hbm (!%p117_p9), %s2664_s2, 512 }
  0x10   : > { %s1404_s7 = sshll.u32 (!%p117_p9), %s1401_s5, 4  ;;  %s1405_s7 = int_to_ptr.hbm [resolvable:$true] %s1404_s7 }
  0x11   : > { %s1922_s8 = sshra.s32 (!%p117_p9), %s1405_s7, 4  ;;  %s1923_s8 = int_to_ptr.hbm [resolvable:$true] %s1922_s8 }
  0x12   : > { %s1924_s14 = scalar_lea.hbm (!%p117_p9), %s1923_s8, 256  ;;  %p1929_p0 = scmp.lt.s32.totalorder (!%p117_p9), %s1923_s8, %s2664_s2 }
  0x13   : > { %v177_v0 = vld [vmem:[%s2663_s1] sm:$0x3f]  ;;  %vm284_vm0 = vcmask 1045504   ;;  %s2672_s23 = smov (!%p139_p10, %s1472_s23), 63  ;;  %vm187_vm1 = vcmask 48128   ;;  %v179_v16 = vld [vmem:[%s2663_s1 + $0x10] sm:$0xff]  ;;  %p1925_p11 = scmp.ne.s32.totalorder %s1923_s8, %s1924_s14 }
  0x14   : > { %1474 = vmatpush.msk.msra.mxu0 %vm284_vm0, %v177_v0  ;;  %s1473_s24 = sshll.u32 %s2672_s23, 3  ;;  %v180_v14 = vld [vmem:[%s2663_s1 + $0x20] sm:$0xff]  ;;  %vm433_vm2 = vcmask 130048   ;;  %vm772_vm3 = vcmask 1043456   ;;  %vm675_vm4 = vcmask 97280   ;;  %p1930_p1 = scmp.lt.s32.totalorder %s1928_s21, %s1924_s14 }
  0x15   : > { %s2044_s27 = scalar_lea.vmem %s2662_s0, %s1473_s24  ;;  %544 = vmatpush.msra.mxu1 %v180_v14  ;;  %v2087_v19 = vld [vmem:[%s2663_s1 + $0x6] ss:$0 sm:$0xff]  ;;  %v183_v14 = vld [vmem:[%s2663_s1 + $0x48] sm:$0xff]  ;;  %p1926_p12 = pnand %p1925_p11, %p2027_p5 }
  0x16   : > { %v145_v1 = vld [vmem:[%s2044_s27] sm:$0xff]  ;;  %v146_v2 = vld [vmem:[%s2044_s27 + $0x8] sm:$0xff]  ;;  %v147_v3 = vld [vmem:[%s2044_s27 + $0x10] sm:$0xff]  ;;  %p1931_p2 = por %p1930_p1, %p1929_p0 }
  0x17   : > { %1475 = vmatmul.msk.f32.vlgmr.msra.gmra.mxu0 %vm187_vm1, %v145_v1  ;;  %v148_v4 = vld [vmem:[%s2044_s27 + $0x18] sm:$0xff]  ;;  %v149_v5 = vld [vmem:[%s2044_s27 + $0x20] sm:$0xff]  ;;  %v150_v6 = vld [vmem:[%s2044_s27 + $0x28] sm:$0xff]  ;;  %545 = vmatpush.msra.mxu1 %v179_v16  ;;  %p1927_p13 = pneg %p1926_p12 }
  0x18   : > { %v151_v7 = vld [vmem:[%s2044_s27 + $0x30] sm:$0xff]  ;;  %v152_v8 = vld [vmem:[%s2044_s27 + $0x38] sm:$0xff]  ;;  %v153_v9 = vld [vmem:[%s2044_s27 + $0x40] sm:$0xff] }
  0x19   : > { %v154_v10 = vld [vmem:[%s2044_s27 + $0x48] sm:$0xff]  ;;  %v155_v11 = vld [vmem:[%s2044_s27 + $0x50] sm:$0xff]  ;;  %v156_v12 = vld [vmem:[%s2044_s27 + $0x58] sm:$0xff]  ;;  %p1932_p3 = pnand %p1931_p2, %p1927_p13 }
  0x1a   : > { %v157_v13 = vld [vmem:[%s2044_s27 + $0x60] sm:$0xff]  ;;  %v158_v15 = vld [vmem:[%s2044_s27 + $0x68] sm:$0xff]  ;;  %v159_v17 = vld [vmem:[%s2044_s27 + $0x70] sm:$0xff] }
  0x1b   : > { %v160_v18 = vld [vmem:[%s2044_s27 + $0x78] sm:$0xff]  ;;  %v161_v21 = vld [vmem:[%s2044_s27 + $0x80] sm:$0xff]  ;;  %v162_v24 = vld [vmem:[%s2044_s27 + $0x88] sm:$0xff] }
  0x1c   : > { %v163_v28 = vld [vmem:[%s2044_s27 + $0x90] sm:$0xff]  ;;  %v164_v32 = vld [vmem:[%s2044_s27 + $0x98] sm:$0xff]  ;;  %v165_v36 = vld [vmem:[%s2044_s27 + $0xa0] sm:$0xff] }
  0x1d   : > { %v166_v40 = vld [vmem:[%s2044_s27 + $0xa8] sm:$0xff]  ;;  %v167_v44 = vld [vmem:[%s2044_s27 + $0xb0] sm:$0xff]  ;;  %v168_v48 = vld [vmem:[%s2044_s27 + $0xb8] sm:$0xff] }
  0x1e   : > { %v169_v52 = vld [vmem:[%s2044_s27 + $0xc0] sm:$0xff]  ;;  %v170_v56 = vld [vmem:[%s2044_s27 + $0xc8] sm:$0xff]  ;;  %v171_v60 = vld [vmem:[%s2044_s27 + $0xd0] sm:$0xff] }
  0x1f   : > { %1476 = vmatmul.msk.f32.gmra.mxu0 %vm187_vm1, %v146_v2  ;;  %v172_v0 = vld [vmem:[%s2044_s27 + $0xd8] sm:$0xff]  ;;  %v175_v16 = vld [vmem:[%s2044_s27 + $0xf0] sm:$0xff] }
  0x27   : > { %1477 = vmatmul.msk.f32.gmra.mxu0 %vm187_vm1, %v147_v3 }
  0x2f   : > { %1478 = vmatmul.msk.f32.gmra.mxu0 %vm187_vm1, %v148_v4  ;;  %v173_v4 = vld [vmem:[%s2044_s27 + $0xe0] sm:$0xff] }
  0x37   : > { %1479 = vmatmul.msk.f32.gmra.mxu0 %vm187_vm1, %v149_v5 }
  0x3f   : > { %1480 = vmatmul.msk.f32.gmra.mxu0 %vm187_vm1, %v150_v6 }
  0x47   : > { %1481 = vmatmul.msk.f32.gmra.mxu0 %vm187_vm1, %v151_v7 }
  0x4f   : > { %1482 = vmatmul.msk.f32.gmra.mxu0 %vm187_vm1, %v152_v8  ;;  %v174_v8 = vld [vmem:[%s2044_s27 + $0xe8] sm:$0xff] }
  0x57   : > { %1483 = vmatmul.msk.f32.gmra.mxu0 %vm187_vm1, %v153_v9 }
  0x5f   : > { %1484 = vmatmul.msk.f32.gmra.mxu0 %vm187_vm1, %v154_v10 }
  0x67   : > { %1485 = vmatmul.msk.f32.gmra.mxu0 %vm187_vm1, %v155_v11  ;;  %v184_v11 = vld [vmem:[%s2663_s1 + $0x50] sm:$0xf] }
  0x68   : > { %1539 = vmatpush.msk.msra.mxu2 %vm772_vm3, %v184_v11 }
  0x6f   : > { %1486 = vmatmul.msk.f32.gmra.mxu0 %vm187_vm1, %v156_v12  ;;  %v185_v12 = vld [vmem:[%s2663_s1 + $0x58] sm:$0xf] }
  0x70   : > { %1572 = vmatpush.msk.msra.mxu3 %vm772_vm3, %v185_v12 }
  0x72   : > { %907 = vmatpush.msra.mxu3 %v183_v14 }
  0x77   : > { %1487 = vmatmul.msk.f32.gmra.mxu0 %vm187_vm1, %v157_v13  ;;  %v182_v13 = vld [vmem:[%s2663_s1 + $0x40] sm:$0xff] }
  0x78   : > { %794 = vmatpush.msra.mxu2 %v182_v13 }
  0x7f   : > { %1488 = vmatmul.msk.f32.gmra.mxu0 %vm187_vm1, %v158_v15 }
  0x87   : > { %1489 = vmatmul.msk.f32.gmra.mxu0 %vm187_vm1, %v159_v17 }
  0x8f   : > { %1490 = vmatmul.msk.f32.gmra.mxu0 %vm187_vm1, %v160_v18 }
  0x94   : > { %v305_v20 = vpop.f32.mrf.mxu0 }
  0x95   : > { %v306_v22 = vadd.f32 %v305_v20, %v2087_v19 }
  0x97   : > { %1652 = vtanh.f32 %v306_v22  ;;  %1491 = vmatmul.msk.f32.gmra.mxu0 %vm187_vm1, %v161_v21  ;;  %v176_v21 = vld [vmem:[%s2044_s27 + $0xf8] sm:$0xff]  ;;  %s135_s27 = sand.u32 1, %s1962_s10  }
  0x98   : > { %s1471_s28 = sshll.u32 %s135_s27, 8  ;;  %s1390_s13 = scalar_lea.sflag [#allocation3], %s135_s27 }
  0x99   : > { %s2494_s29 = scalar_lea.vmem [#allocation2], %s1471_s28 }
  0x9a   : > { %s1402_s6 = sshll.u32 %s2494_s29, 4  ;;  %s1403_s6 = int_to_ptr.vmem [resolvable:$true] %s1402_s6 }
  0x9c   : > { %v308_v23 = vpop.f32.mrf.mxu0 }
  0x9d   : > { %v1653_v25 = vpop.eup %1652  ;;  %v309_v26 = vadd.f32 %v308_v23, %v2087_v19 }
  0x9e   : > { %1507 = vmatmul.msk.f32.vlgmr.msra.gmra.mxu1 %vm433_vm2, %v1653_v25 }
  0x9f   : > { %1654 = vtanh.f32 %v309_v26  ;;  %1492 = vmatmul.msk.f32.gmra.mxu0 %vm187_vm1, %v162_v24 }
  0xa4   : > { %v311_v27 = vpop.f32.mrf.mxu0 }
  0xa5   : > { %v1655_v29 = vpop.eup %1654  ;;  %v312_v30 = vadd.f32 %v311_v27, %v2087_v19  ;;  %v2169_v27 = vld [vmem:[%s2663_s1 + $0x30] ss:$0 sm:$0xff] }
  0xa6   : > { %1508 = vmatmul.msk.f32.gmra.mxu1 %vm433_vm2, %v1655_v29 }
  0xa7   : > { %1656 = vtanh.f32 %v312_v30  ;;  %1493 = vmatmul.msk.f32.gmra.mxu0 %vm187_vm1, %v163_v28 }
  0xac   : > { %v314_v31 = vpop.f32.mrf.mxu0 }
  0xad   : > { %v1657_v33 = vpop.eup %1656  ;;  %v315_v34 = vadd.f32 %v314_v31, %v2087_v19 }
  0xae   : > { %1509 = vmatmul.msk.f32.gmra.mxu1 %vm433_vm2, %v1657_v33 }
  0xaf   : > { %1658 = vtanh.f32 %v315_v34  ;;  %1494 = vmatmul.msk.f32.gmra.mxu0 %vm187_vm1, %v164_v32 }
  0xb4   : > { %v317_v35 = vpop.f32.mrf.mxu0 }
  0xb5   : > { %v1659_v37 = vpop.eup %1658  ;;  %v318_v38 = vadd.f32 %v317_v35, %v2087_v19 }
  0xb6   : > { %1510 = vmatmul.msk.f32.gmra.mxu1 %vm433_vm2, %v1659_v37 }
  0xb7   : > { %1660 = vtanh.f32 %v318_v38  ;;  %1495 = vmatmul.msk.f32.gmra.mxu0 %vm187_vm1, %v165_v36 }
  0xbc   : > { %v320_v39 = vpop.f32.mrf.mxu0 }
  0xbd   : > { %v1661_v41 = vpop.eup %1660  ;;  %v321_v42 = vadd.f32 %v320_v39, %v2087_v19 }
  0xbe   : > { %1511 = vmatmul.msk.f32.gmra.mxu1 %vm433_vm2, %v1661_v41 }
  0xbf   : > { %1662 = vtanh.f32 %v321_v42  ;;  %1496 = vmatmul.msk.f32.gmra.mxu0 %vm187_vm1, %v166_v40 }
  0xc4   : > { %v323_v43 = vpop.f32.mrf.mxu0 }
  0xc5   : > { %v1663_v45 = vpop.eup %1662  ;;  %v324_v46 = vadd.f32 %v323_v43, %v2087_v19 }
  0xc6   : > { %1512 = vmatmul.msk.f32.gmra.mxu1 %vm433_vm2, %v1663_v45 }
  0xc7   : > { %1664 = vtanh.f32 %v324_v46  ;;  %1497 = vmatmul.msk.f32.gmra.mxu0 %vm187_vm1, %v167_v44 }
  0xcc   : > { %v326_v47 = vpop.f32.mrf.mxu0 }
  0xcd   : > { %v1665_v49 = vpop.eup %1664  ;;  %v327_v50 = vadd.f32 %v326_v47, %v2087_v19 }
  0xce   : > { %1513 = vmatmul.msk.f32.gmra.mxu1 %vm433_vm2, %v1665_v49 }
  0xcf   : > { %1666 = vtanh.f32 %v327_v50  ;;  %1498 = vmatmul.msk.f32.gmra.mxu0 %vm187_vm1, %v168_v48 }
  0xd4   : > { %v329_v51 = vpop.f32.mrf.mxu0 }
  0xd5   : > { %v1667_v53 = vpop.eup %1666  ;;  %v330_v54 = vadd.f32 %v329_v51, %v2087_v19 }
  0xd6   : > { %1514 = vmatmul.msk.f32.gmra.mxu1 %vm433_vm2, %v1667_v53 }
  0xd7   : > { %1668 = vtanh.f32 %v330_v54  ;;  %1499 = vmatmul.msk.f32.gmra.mxu0 %vm187_vm1, %v169_v52 }
  0xdc   : > { %v332_v55 = vpop.f32.mrf.mxu0 }
  0xdd   : > { %v1669_v57 = vpop.eup %1668  ;;  %v333_v58 = vadd.f32 %v332_v55, %v2087_v19 }
  0xde   : > { %1515 = vmatmul.msk.f32.gmra.mxu1 %vm433_vm2, %v1669_v57 }
  0xdf   : > { %1670 = vtanh.f32 %v333_v58  ;;  %1500 = vmatmul.msk.f32.gmra.mxu0 %vm187_vm1, %v170_v56 }
  0xe4   : > { %v335_v59 = vpop.f32.mrf.mxu0 }
  0xe5   : > { %v1671_v61 = vpop.eup %1670  ;;  %v336_v62 = vadd.f32 %v335_v59, %v2087_v19 }
  0xe6   : > { %1516 = vmatmul.msk.f32.gmra.mxu1 %vm433_vm2, %v1671_v61 }
  0xe7   : > { %1672 = vtanh.f32 %v336_v62  ;;  %1501 = vmatmul.msk.f32.gmra.mxu0 %vm187_vm1, %v171_v60 }
  0xec   : > { %v338_v63 = vpop.f32.mrf.mxu0 }
  0xed   : > { %v1673_v1 = vpop.eup %1672  ;;  %v339_v2 = vadd.f32 %v338_v63, %v2087_v19 }
  0xee   : > { %1517 = vmatmul.msk.f32.gmra.mxu1 %vm433_vm2, %v1673_v1 }
  0xef   : > { %1674 = vtanh.f32 %v339_v2  ;;  %1502 = vmatmul.msk.f32.gmra.mxu0 %vm187_vm1, %v172_v0 }
  0xf4   : > { %v341_v3 = vpop.f32.mrf.mxu0 }
  0xf5   : > { %v1675_v5 = vpop.eup %1674  ;;  %v342_v6 = vadd.f32 %v341_v3, %v2087_v19 }
  0xf6   : > { %1518 = vmatmul.msk.f32.gmra.mxu1 %vm433_vm2, %v1675_v5 }
  0xf7   : > { %1676 = vtanh.f32 %v342_v6  ;;  %1503 = vmatmul.msk.f32.gmra.mxu0 %vm187_vm1, %v173_v4 }
  0xfc   : > { %v344_v7 = vpop.f32.mrf.mxu0 }
  0xfd   : > { %v1677_v9 = vpop.eup %1676  ;;  %v345_v10 = vadd.f32 %v344_v7, %v2087_v19 }
  0xfe   : > { %1519 = vmatmul.msk.f32.gmra.mxu1 %vm433_vm2, %v1677_v9 }
  0xff   : > { %1678 = vtanh.f32 %v345_v10  ;;  %1504 = vmatmul.msk.f32.gmra.mxu0 %vm187_vm1, %v174_v8 }
 0x104   : > { %v347_v15 = vpop.f32.mrf.mxu0 }
 0x105   : > { %v1679_v17 = vpop.eup %1678  ;;  %v348_v18 = vadd.f32 %v347_v15, %v2087_v19 }
 0x106   : > { %1520 = vmatmul.msk.f32.gmra.mxu1 %vm433_vm2, %v1679_v17 }
 0x107   : > { %1680 = vtanh.f32 %v348_v18  ;;  %1505 = vmatmul.msk.f32.gmra.mxu0 %vm187_vm1, %v175_v16 }
 0x10c   : > { %v350_v20 = vpop.f32.mrf.mxu0 }
 0x10d   : > { %v1681_v22 = vpop.eup %1680  ;;  %v351_v23 = vadd.f32 %v350_v20, %v2087_v19 }
 0x10e   : > { %1521 = vmatmul.msk.f32.gmra.mxu1 %vm433_vm2, %v1681_v22 }
 0x10f   : > { %1682 = vtanh.f32 %v351_v23  ;;  %1506 = vmatmul.msk.f32.gmra.mxu0 %vm187_vm1, %v176_v21 }
 0x114   : > { %v353_v24 = vpop.f32.mrf.mxu0 }
 0x115   : > { %v1683_v25 = vpop.eup %1682  ;;  %v354_v26 = vadd.f32 %v353_v24, %v2087_v19 }
 0x116   : > { %1522 = vmatmul.msk.f32.gmra.mxu1 %vm433_vm2, %v1683_v25 }
 0x117   : > { %1684 = vtanh.f32 %v354_v26 }
 0x11b   : > { %v547_v28 = vpop.f32.mrf.mxu1 }
 0x11c   : > { %v548_v29 = vadd.f32 %v547_v28, %v2169_v27  ;;  %v356_v30 = vpop.f32.mrf.mxu0 }
 0x11d   : > { %v1685_v31 = vpop.eup %1684  ;;  %v357_v32 = vadd.f32 %v356_v30, %v2087_v19 }
 0x11e   : > { %1686 = vtanh.f32 %v548_v29  ;;  %1523 = vmatmul.msk.f32.gmra.mxu1 %vm433_vm2, %v1685_v31 }
 0x11f   : > { %1688 = vtanh.f32 %v357_v32 }
 0x123   : > { %v550_v33 = vpop.f32.mrf.mxu1 }
 0x124   : > { %v1687_v34 = vpop.eup %1686  ;;  %v551_v35 = vadd.f32 %v550_v33, %v2169_v27  ;;  %v359_v36 = vpop.f32.mrf.mxu0 }
 0x125   : > { %v1689_v37 = vpop.eup %1688  ;;  %v360_v38 = vadd.f32 %v359_v36, %v2087_v19  ;;  %1540 = vmatmul.msk.f32.vlgmr.msra.gmra.mxu2 %vm675_vm4, %v1687_v34  ;;  %1573 = vmatmul.msk.f32.vlgmr.msra.gmra.mxu3 %vm675_vm4, %v1687_v34 }
 0x126   : > { %1690 = vtanh.f32 %v551_v35  ;;  %1524 = vmatmul.msk.f32.gmra.mxu1 %vm433_vm2, %v1689_v37 }
 0x127   : > { %1692 = vtanh.f32 %v360_v38 }
 0x12b   : > { %v553_v39 = vpop.f32.mrf.mxu1 }
 0x12c   : > { %v1691_v40 = vpop.eup %1690  ;;  %v554_v41 = vadd.f32 %v553_v39, %v2169_v27  ;;  %v362_v42 = vpop.f32.mrf.mxu0 }
 0x12d   : > { %v1693_v43 = vpop.eup %1692  ;;  %v363_v44 = vadd.f32 %v362_v42, %v2087_v19  ;;  %1541 = vmatmul.msk.f32.gmra.mxu2 %vm675_vm4, %v1691_v40  ;;  %1574 = vmatmul.msk.f32.gmra.mxu3 %vm675_vm4, %v1691_v40 }
 0x12e   : > { %1694 = vtanh.f32 %v554_v41  ;;  %1525 = vmatmul.msk.f32.gmra.mxu1 %vm433_vm2, %v1693_v43 }
 0x12f   : > { %1696 = vtanh.f32 %v363_v44 }
 0x133   : > { %v556_v45 = vpop.f32.mrf.mxu1 }
 0x134   : > { %v1695_v46 = vpop.eup %1694  ;;  %v557_v47 = vadd.f32 %v556_v45, %v2169_v27  ;;  %v365_v48 = vpop.f32.mrf.mxu0 }
 0x135   : > { %v1697_v49 = vpop.eup %1696  ;;  %v366_v50 = vadd.f32 %v365_v48, %v2087_v19  ;;  %1542 = vmatmul.msk.f32.gmra.mxu2 %vm675_vm4, %v1695_v46  ;;  %1575 = vmatmul.msk.f32.gmra.mxu3 %vm675_vm4, %v1695_v46 }
 0x136   : > { %1698 = vtanh.f32 %v557_v47  ;;  %1526 = vmatmul.msk.f32.gmra.mxu1 %vm433_vm2, %v1697_v49 }
 0x137   : > { %1700 = vtanh.f32 %v366_v50 }
 0x13b   : > { %v559_v51 = vpop.f32.mrf.mxu1 }
 0x13c   : > { %v1699_v52 = vpop.eup %1698  ;;  %v560_v53 = vadd.f32 %v559_v51, %v2169_v27  ;;  %v368_v54 = vpop.f32.mrf.mxu0 }
 0x13d   : > { %v1701_v55 = vpop.eup %1700  ;;  %v369_v56 = vadd.f32 %v368_v54, %v2087_v19  ;;  %1543 = vmatmul.msk.f32.gmra.mxu2 %vm675_vm4, %v1699_v52  ;;  %1576 = vmatmul.msk.f32.gmra.mxu3 %vm675_vm4, %v1699_v52 }
 0x13e   : > { %1702 = vtanh.f32 %v560_v53  ;;  %1527 = vmatmul.msk.f32.gmra.mxu1 %vm433_vm2, %v1701_v55 }
 0x13f   : > { %1704 = vtanh.f32 %v369_v56 }
 0x143   : > { %v562_v57 = vpop.f32.mrf.mxu1 }
 0x144   : > { %v1703_v58 = vpop.eup %1702  ;;  %v563_v59 = vadd.f32 %v562_v57, %v2169_v27  ;;  %v371_v60 = vpop.f32.mrf.mxu0 }
 0x145   : > { %v1705_v61 = vpop.eup %1704  ;;  %v372_v62 = vadd.f32 %v371_v60, %v2087_v19  ;;  %1544 = vmatmul.msk.f32.gmra.mxu2 %vm675_vm4, %v1703_v58  ;;  %1577 = vmatmul.msk.f32.gmra.mxu3 %vm675_vm4, %v1703_v58 }
 0x146   : > { %1706 = vtanh.f32 %v563_v59  ;;  %1528 = vmatmul.msk.f32.gmra.mxu1 %vm433_vm2, %v1705_v61 }
 0x147   : > { %1708 = vtanh.f32 %v372_v62 }
 0x14b   : > { %v565_v63 = vpop.f32.mrf.mxu1 }
 0x14c   : > { %v1707_v0 = vpop.eup %1706  ;;  %v566_v1 = vadd.f32 %v565_v63, %v2169_v27  ;;  %v374_v2 = vpop.f32.mrf.mxu0 }
 0x14d   : > { %v1709_v3 = vpop.eup %1708  ;;  %v375_v4 = vadd.f32 %v374_v2, %v2087_v19  ;;  %1545 = vmatmul.msk.f32.gmra.mxu2 %vm675_vm4, %v1707_v0  ;;  %1578 = vmatmul.msk.f32.gmra.mxu3 %vm675_vm4, %v1707_v0  ;;  %v2257_v2 = vld [vmem:[%s2663_s1 + $0x56] ss:$0 sm:$0xff] }
 0x14e   : > { %1710 = vtanh.f32 %v566_v1  ;;  %1529 = vmatmul.msk.f32.gmra.mxu1 %vm433_vm2, %v1709_v3 }
 0x14f   : > { %1712 = vtanh.f32 %v375_v4 }
 0x153   : > { %v568_v5 = vpop.f32.mrf.mxu1 }
 0x154   : > { %v1711_v6 = vpop.eup %1710  ;;  %v569_v7 = vadd.f32 %v568_v5, %v2169_v27  ;;  %v377_v8 = vpop.f32.mrf.mxu0 }
 0x155   : > { %v1713_v9 = vpop.eup %1712  ;;  %v378_v10 = vadd.f32 %v377_v8, %v2087_v19  ;;  %1546 = vmatmul.msk.f32.gmra.mxu2 %vm675_vm4, %v1711_v6  ;;  %1579 = vmatmul.msk.f32.gmra.mxu3 %vm675_vm4, %v1711_v6 }
 0x156   : > { %1714 = vtanh.f32 %v569_v7  ;;  %1530 = vmatmul.msk.f32.gmra.mxu1 %vm433_vm2, %v1713_v9 }
 0x157   : > { %1716 = vtanh.f32 %v378_v10 }
 0x15b   : > { %v571_v11 = vpop.f32.mrf.mxu1 }
 0x15c   : > { %v1715_v12 = vpop.eup %1714  ;;  %v572_v13 = vadd.f32 %v571_v11, %v2169_v27  ;;  %v380_v14 = vpop.f32.mrf.mxu0 }
 0x15d   : > { %v1717_v15 = vpop.eup %1716  ;;  %v381_v16 = vadd.f32 %v380_v14, %v2087_v19  ;;  %1547 = vmatmul.msk.f32.gmra.mxu2 %vm675_vm4, %v1715_v12  ;;  %1580 = vmatmul.msk.f32.gmra.mxu3 %vm675_vm4, %v1715_v12 }
 0x15e   : > { %1718 = vtanh.f32 %v572_v13  ;;  %1531 = vmatmul.msk.f32.gmra.mxu1 %vm433_vm2, %v1717_v15 }
 0x15f   : > { %1720 = vtanh.f32 %v381_v16 }
 0x163   : > { %v574_v17 = vpop.f32.mrf.mxu1 }
 0x164   : > { %v1719_v18 = vpop.eup %1718  ;;  %v575_v20 = vadd.f32 %v574_v17, %v2169_v27  ;;  %v383_v21 = vpop.f32.mrf.mxu0 }
 0x165   : > { %v1721_v22 = vpop.eup %1720  ;;  %v384_v23 = vadd.f32 %v383_v21, %v2087_v19  ;;  %1548 = vmatmul.msk.f32.gmra.mxu2 %vm675_vm4, %v1719_v18  ;;  %1581 = vmatmul.msk.f32.gmra.mxu3 %vm675_vm4, %v1719_v18 }
 0x166   : > { %1722 = vtanh.f32 %v575_v20  ;;  %1532 = vmatmul.msk.f32.gmra.mxu1 %vm433_vm2, %v1721_v22 }
 0x167   : > { %1724 = vtanh.f32 %v384_v23 }
 0x16b   : > { %v577_v24 = vpop.f32.mrf.mxu1 }
 0x16c   : > { %v1723_v25 = vpop.eup %1722  ;;  %v578_v26 = vadd.f32 %v577_v24, %v2169_v27  ;;  %v386_v28 = vpop.f32.mrf.mxu0 }
 0x16d   : > { %v1725_v29 = vpop.eup %1724  ;;  %v387_v30 = vadd.f32 %v386_v28, %v2087_v19  ;;  %1549 = vmatmul.msk.f32.gmra.mxu2 %vm675_vm4, %v1723_v25  ;;  %1582 = vmatmul.msk.f32.gmra.mxu3 %vm675_vm4, %v1723_v25 }
 0x16e   : > { %1726 = vtanh.f32 %v578_v26  ;;  %1533 = vmatmul.msk.f32.gmra.mxu1 %vm433_vm2, %v1725_v29 }
 0x16f   : > { %1728 = vtanh.f32 %v387_v30 }
 0x173   : > { %v580_v31 = vpop.f32.mrf.mxu1 }
 0x174   : > { %v1727_v32 = vpop.eup %1726  ;;  %v581_v33 = vadd.f32 %v580_v31, %v2169_v27  ;;  %v389_v34 = vpop.f32.mrf.mxu0 }
 0x175   : > { %v1729_v35 = vpop.eup %1728  ;;  %v390_v36 = vadd.f32 %v389_v34, %v2087_v19  ;;  %1550 = vmatmul.msk.f32.gmra.mxu2 %vm675_vm4, %v1727_v32  ;;  %1583 = vmatmul.msk.f32.gmra.mxu3 %vm675_vm4, %v1727_v32 }
 0x176   : > { %1730 = vtanh.f32 %v581_v33  ;;  %1534 = vmatmul.msk.f32.gmra.mxu1 %vm433_vm2, %v1729_v35 }
 0x177   : > { %1732 = vtanh.f32 %v390_v36 }
 0x17b   : > { %v583_v37 = vpop.f32.mrf.mxu1 }
 0x17c   : > { %v1731_v38 = vpop.eup %1730  ;;  %v584_v39 = vadd.f32 %v583_v37, %v2169_v27  ;;  %v392_v40 = vpop.f32.mrf.mxu0 }
 0x17d   : > { %v1733_v41 = vpop.eup %1732  ;;  %v393_v42 = vadd.f32 %v392_v40, %v2087_v19  ;;  %1551 = vmatmul.msk.f32.gmra.mxu2 %vm675_vm4, %v1731_v38  ;;  %1584 = vmatmul.msk.f32.gmra.mxu3 %vm675_vm4, %v1731_v38 }
 0x17e   : > { %1734 = vtanh.f32 %v584_v39  ;;  %1535 = vmatmul.msk.f32.gmra.mxu1 %vm433_vm2, %v1733_v41 }
 0x17f   : > { %1736 = vtanh.f32 %v393_v42 }
 0x183   : > { %v586_v43 = vpop.f32.mrf.mxu1 }
 0x184   : > { %v1735_v44 = vpop.eup %1734  ;;  %v587_v45 = vadd.f32 %v586_v43, %v2169_v27  ;;  %v395_v46 = vpop.f32.mrf.mxu0 }
 0x185   : > { %v1737_v47 = vpop.eup %1736  ;;  %v396_v48 = vadd.f32 %v395_v46, %v2087_v19  ;;  %1552 = vmatmul.msk.f32.gmra.mxu2 %vm675_vm4, %v1735_v44  ;;  %1585 = vmatmul.msk.f32.gmra.mxu3 %vm675_vm4, %v1735_v44 }
 0x186   : > { %1738 = vtanh.f32 %v587_v45  ;;  %1536 = vmatmul.msk.f32.gmra.mxu1 %vm433_vm2, %v1737_v47 }
 0x187   : > { %1740 = vtanh.f32 %v396_v48 }
 0x18b   : > { %v589_v49 = vpop.f32.mrf.mxu1 }
 0x18c   : > { %v1739_v50 = vpop.eup %1738  ;;  %v590_v51 = vadd.f32 %v589_v49, %v2169_v27  ;;  %v398_v52 = vpop.f32.mrf.mxu0 }
 0x18d   : > { %v1741_v53 = vpop.eup %1740  ;;  %v399_v54 = vadd.f32 %v398_v52, %v2087_v19  ;;  %1553 = vmatmul.msk.f32.gmra.mxu2 %vm675_vm4, %v1739_v50  ;;  %1586 = vmatmul.msk.f32.gmra.mxu3 %vm675_vm4, %v1739_v50 }
 0x18e   : > { %1742 = vtanh.f32 %v590_v51  ;;  %1537 = vmatmul.msk.f32.gmra.mxu1 %vm433_vm2, %v1741_v53 }
 0x18f   : > { %1744 = vtanh.f32 %v399_v54 }
 0x193   : > { %v592_v55 = vpop.f32.mrf.mxu1 }
 0x194   : > { %v1743_v56 = vpop.eup %1742  ;;  %v593_v57 = vadd.f32 %v592_v55, %v2169_v27 }
 0x195   : > { %v1745_v58 = vpop.eup %1744  ;;  %1554 = vmatmul.msk.f32.gmra.mxu2 %vm675_vm4, %v1743_v56  ;;  %1587 = vmatmul.msk.f32.gmra.mxu3 %vm675_vm4, %v1743_v56 }
 0x196   : > { %1746 = vtanh.f32 %v593_v57  ;;  %1538 = vmatmul.msk.f32.gmra.mxu1 %vm433_vm2, %v1745_v58 }
 0x19b   : > { %v595_v19 = vpop.f32.mrf.mxu1 }
 0x19c   : > { %v1747_v59 = vpop.eup %1746  ;;  %v596_v60 = vadd.f32 %v595_v19, %v2169_v27 }
 0x19d   : > { %1555 = vmatmul.msk.f32.gmra.mxu2 %vm675_vm4, %v1747_v59  ;;  %1588 = vmatmul.msk.f32.gmra.mxu3 %vm675_vm4, %v1747_v59 }
 0x19e   : > { %1748 = vtanh.f32 %v596_v60 }
 0x1a3   : > { %v598_v61 = vpop.f32.mrf.mxu1 }
 0x1a4   : > { %v1749_v62 = vpop.eup %1748  ;;  %v599_v63 = vadd.f32 %v598_v61, %v2169_v27 }
 0x1a5   : > { %1556 = vmatmul.msk.f32.gmra.mxu2 %vm675_vm4, %v1749_v62  ;;  %1589 = vmatmul.msk.f32.gmra.mxu3 %vm675_vm4, %v1749_v62 }
 0x1a6   : > { %1750 = vtanh.f32 %v599_v63 }
 0x1a8   : > { %v796_v0 = vpop.f32.mrf.mxu2  ;;  %v909_v1 = vpop.f32.mrf.mxu3 }
 0x1a9   : > { %v1005_v3 = vmul.f32 %v909_v1, %v796_v0 }
 0x1ab   : > { %v601_v4 = vpop.f32.mrf.mxu1  ;;  %v2260_v5 = vadd.f32 %v1005_v3, %v2257_v2 }
 0x1ac   : > { %v1751_v6 = vpop.eup %1750  ;;  %v602_v7 = vadd.f32 %v601_v4, %v2169_v27 }
 0x1ad   : > { %1557 = vmatmul.msk.f32.gmra.mxu2 %vm675_vm4, %v1751_v6  ;;  %1590 = vmatmul.msk.f32.gmra.mxu3 %vm675_vm4, %v1751_v6 }
 0x1ae   : > { %1752 = vtanh.f32 %v602_v7  ;;  %1069 = vmax.xlane.f32.xlu0 %v2260_v5 }
 0x1b0   : > { %v799_v8 = vpop.f32.mrf.mxu2  ;;  %v912_v9 = vpop.f32.mrf.mxu3 }
 0x1b1   : > { %v1006_v10 = vmul.f32 %v912_v9, %v799_v8 }
 0x1b3   : > { %v604_v11 = vpop.f32.mrf.mxu1  ;;  %v2267_v12 = vadd.f32 %v1006_v10, %v2257_v2 }
 0x1b4   : > { %v1753_v13 = vpop.eup %1752  ;;  %v605_v14 = vadd.f32 %v604_v11, %v2169_v27 }
 0x1b5   : > { %1558 = vmatmul.msk.f32.gmra.mxu2 %vm675_vm4, %v1753_v13  ;;  %1591 = vmatmul.msk.f32.gmra.mxu3 %vm675_vm4, %v1753_v13 }
 0x1b6   : > { %1754 = vtanh.f32 %v605_v14  ;;  %1071 = vmax.xlane.f32.xlu0 %v2267_v12 }
 0x1b8   : > { %v802_v15 = vpop.f32.mrf.mxu2  ;;  %v915_v16 = vpop.f32.mrf.mxu3 }
 0x1b9   : > { %v1007_v17 = vmul.f32 %v915_v16, %v802_v15 }
 0x1bb   : > { %v607_v18 = vpop.f32.mrf.mxu1  ;;  %v2274_v20 = vadd.f32 %v1007_v17, %v2257_v2 }
 0x1bc   : > { %v1755_v21 = vpop.eup %1754  ;;  %v608_v22 = vadd.f32 %v607_v18, %v2169_v27 }
 0x1bd   : > { %1559 = vmatmul.msk.f32.gmra.mxu2 %vm675_vm4, %v1755_v21  ;;  %1592 = vmatmul.msk.f32.gmra.mxu3 %vm675_vm4, %v1755_v21 }
 0x1be   : > { %1756 = vtanh.f32 %v608_v22  ;;  %1073 = vmax.xlane.f32.xlu1 %v2274_v20 }
 0x1c0   : > { %v805_v23 = vpop.f32.mrf.mxu2  ;;  %v918_v24 = vpop.f32.mrf.mxu3 }
 0x1c1   : > { %v1008_v25 = vmul.f32 %v918_v24, %v805_v23 }
 0x1c3   : > { %v610_v26 = vpop.f32.mrf.mxu1  ;;  %v2281_v28 = vadd.f32 %v1008_v25, %v2257_v2 }
 0x1c4   : > { %v1757_v29 = vpop.eup %1756  ;;  %v611_v30 = vadd.f32 %v610_v26, %v2169_v27 }
 0x1c5   : > { %1560 = vmatmul.msk.f32.gmra.mxu2 %vm675_vm4, %v1757_v29  ;;  %1593 = vmatmul.msk.f32.gmra.mxu3 %vm675_vm4, %v1757_v29 }
 0x1c6   : > { %1758 = vtanh.f32 %v611_v30  ;;  %1075 = vmax.xlane.f32.xlu1 %v2281_v28 }
 0x1c8   : > { %v808_v31 = vpop.f32.mrf.mxu2  ;;  %v921_v32 = vpop.f32.mrf.mxu3 }
 0x1c9   : > { %v1009_v33 = vmul.f32 %v921_v32, %v808_v31 }
 0x1cb   : > { %v613_v34 = vpop.f32.mrf.mxu1  ;;  %v2288_v35 = vadd.f32 %v1009_v33, %v2257_v2 }
 0x1cc   : > { %v1759_v36 = vpop.eup %1758  ;;  %v614_v37 = vadd.f32 %v613_v34, %v2169_v27 }
 0x1cd   : > { %1561 = vmatmul.msk.f32.gmra.mxu2 %vm675_vm4, %v1759_v36  ;;  %1594 = vmatmul.msk.f32.gmra.mxu3 %vm675_vm4, %v1759_v36 }
 0x1ce   : > { %1760 = vtanh.f32 %v614_v37  ;;  %1077 = vmax.xlane.f32.xlu2 %v2288_v35 }
 0x1d0   : > { %v811_v38 = vpop.f32.mrf.mxu2  ;;  %v924_v39 = vpop.f32.mrf.mxu3 }
 0x1d1   : > { %v1010_v40 = vmul.f32 %v924_v39, %v811_v38 }
 0x1d3   : > { %v616_v41 = vpop.f32.mrf.mxu1  ;;  %v2295_v42 = vadd.f32 %v1010_v40, %v2257_v2 }
 0x1d4   : > { %v1761_v43 = vpop.eup %1760  ;;  %v617_v44 = vadd.f32 %v616_v41, %v2169_v27 }
 0x1d5   : > { %1562 = vmatmul.msk.f32.gmra.mxu2 %vm675_vm4, %v1761_v43  ;;  %1595 = vmatmul.msk.f32.gmra.mxu3 %vm675_vm4, %v1761_v43 }
 0x1d6   : > { %1762 = vtanh.f32 %v617_v44  ;;  %1079 = vmax.xlane.f32.xlu2 %v2295_v42 }
 0x1d8   : > { %v814_v45 = vpop.f32.mrf.mxu2  ;;  %v927_v46 = vpop.f32.mrf.mxu3 }
 0x1d9   : > { %v1011_v47 = vmul.f32 %v927_v46, %v814_v45 }
 0x1db   : > { %v619_v48 = vpop.f32.mrf.mxu1  ;;  %v2302_v49 = vadd.f32 %v1011_v47, %v2257_v2 }
 0x1dc   : > { %v1763_v50 = vpop.eup %1762  ;;  %v620_v51 = vadd.f32 %v619_v48, %v2169_v27 }
 0x1dd   : > { %1563 = vmatmul.msk.f32.gmra.mxu2 %vm675_vm4, %v1763_v50  ;;  %1596 = vmatmul.msk.f32.gmra.mxu3 %vm675_vm4, %v1763_v50 }
 0x1de   : > { %1764 = vtanh.f32 %v620_v51  ;;  %1081 = vmax.xlane.f32.xlu0 %v2302_v49 }
 0x1e0   : > { %v817_v52 = vpop.f32.mrf.mxu2  ;;  %v930_v53 = vpop.f32.mrf.mxu3 }
 0x1e1   : > { %v1012_v54 = vmul.f32 %v930_v53, %v817_v52 }
 0x1e3   : > { %v622_v55 = vpop.f32.mrf.mxu1  ;;  %v2309_v56 = vadd.f32 %v1012_v54, %v2257_v2 }
 0x1e4   : > { %v1765_v57 = vpop.eup %1764  ;;  %v623_v58 = vadd.f32 %v622_v55, %v2169_v27 }
 0x1e5   : > { %1564 = vmatmul.msk.f32.gmra.mxu2 %vm675_vm4, %v1765_v57  ;;  %1597 = vmatmul.msk.f32.gmra.mxu3 %vm675_vm4, %v1765_v57 }
 0x1e6   : > { %1766 = vtanh.f32 %v623_v58  ;;  %1083 = vmax.xlane.f32.xlu1 %v2309_v56 }
 0x1e8   : > { %v820_v19 = vpop.f32.mrf.mxu2  ;;  %v933_v59 = vpop.f32.mrf.mxu3 }
 0x1e9   : > { %v1013_v60 = vmul.f32 %v933_v59, %v820_v19 }
 0x1eb   : > { %v625_v61 = vpop.f32.mrf.mxu1  ;;  %v2316_v62 = vadd.f32 %v1013_v60, %v2257_v2 }
 0x1ec   : > { %v1767_v63 = vpop.eup %1766  ;;  %v626_v0 = vadd.f32 %v625_v61, %v2169_v27 }
 0x1ed   : > { %1565 = vmatmul.msk.f32.gmra.mxu2 %vm675_vm4, %v1767_v63  ;;  %1598 = vmatmul.msk.f32.gmra.mxu3 %vm675_vm4, %v1767_v63 }
 0x1ee   : > { %1768 = vtanh.f32 %v626_v0  ;;  %1085 = vmax.xlane.f32.xlu2 %v2316_v62 }
 0x1f0   : > { %v823_v1 = vpop.f32.mrf.mxu2  ;;  %v936_v3 = vpop.f32.mrf.mxu3 }
 0x1f1   : > { %v1014_v4 = vmul.f32 %v936_v3, %v823_v1 }
 0x1f3   : > { %v628_v6 = vpop.f32.mrf.mxu1  ;;  %v2323_v7 = vadd.f32 %v1014_v4, %v2257_v2 }
 0x1f4   : > { %v1769_v8 = vpop.eup %1768  ;;  %v629_v9 = vadd.f32 %v628_v6, %v2169_v27 }
 0x1f5   : > { %1566 = vmatmul.msk.f32.gmra.mxu2 %vm675_vm4, %v1769_v8  ;;  %1599 = vmatmul.msk.f32.gmra.mxu3 %vm675_vm4, %v1769_v8 }
 0x1f6   : > { %1770 = vtanh.f32 %v629_v9  ;;  %1087 = vmax.xlane.f32.xlu0 %v2323_v7 }
 0x1f8   : > { %v826_v10 = vpop.f32.mrf.mxu2  ;;  %v939_v11 = vpop.f32.mrf.mxu3 }
 0x1f9   : > { %v1015_v13 = vmul.f32 %v939_v11, %v826_v10 }
 0x1fb   : > { %v631_v14 = vpop.f32.mrf.mxu1  ;;  %v2330_v15 = vadd.f32 %v1015_v13, %v2257_v2 }
 0x1fc   : > { %v1771_v16 = vpop.eup %1770  ;;  %v632_v17 = vadd.f32 %v631_v14, %v2169_v27 }
 0x1fd   : > { %1567 = vmatmul.msk.f32.gmra.mxu2 %vm675_vm4, %v1771_v16  ;;  %1600 = vmatmul.msk.f32.gmra.mxu3 %vm675_vm4, %v1771_v16 }
 0x1fe   : > { %1772 = vtanh.f32 %v632_v17  ;;  %1089 = vmax.xlane.f32.xlu1 %v2330_v15 }
 0x200   : > { %v829_v18 = vpop.f32.mrf.mxu2  ;;  %v942_v21 = vpop.f32.mrf.mxu3 }
 0x201   : > { %v1016_v22 = vmul.f32 %v942_v21, %v829_v18 }
 0x203   : > { %v634_v23 = vpop.f32.mrf.mxu1  ;;  %v2337_v24 = vadd.f32 %v1016_v22, %v2257_v2 }
 0x204   : > { %v1773_v25 = vpop.eup %1772  ;;  %v635_v26 = vadd.f32 %v634_v23, %v2169_v27 }
 0x205   : > { %1568 = vmatmul.msk.f32.gmra.mxu2 %vm675_vm4, %v1773_v25  ;;  %1601 = vmatmul.msk.f32.gmra.mxu3 %vm675_vm4, %v1773_v25 }
 0x206   : > { %1774 = vtanh.f32 %v635_v26  ;;  %1091 = vmax.xlane.f32.xlu2 %v2337_v24 }
 0x208   : > { %v832_v29 = vpop.f32.mrf.mxu2  ;;  %v945_v30 = vpop.f32.mrf.mxu3 }
 0x209   : > { %v1017_v31 = vmul.f32 %v945_v30, %v832_v29 }
 0x20b   : > { %v637_v32 = vpop.f32.mrf.mxu1  ;;  %v2344_v33 = vadd.f32 %v1017_v31, %v2257_v2 }
 0x20c   : > { %v1775_v34 = vpop.eup %1774  ;;  %v638_v36 = vadd.f32 %v637_v32, %v2169_v27 }
 0x20d   : > { %1569 = vmatmul.msk.f32.gmra.mxu2 %vm675_vm4, %v1775_v34  ;;  %1602 = vmatmul.msk.f32.gmra.mxu3 %vm675_vm4, %v1775_v34 }
 0x20e   : > { %1776 = vtanh.f32 %v638_v36  ;;  %1093 = vmax.xlane.f32.xlu0 %v2344_v33 }
 0x210   : > { %v835_v37 = vpop.f32.mrf.mxu2  ;;  %v948_v38 = vpop.f32.mrf.mxu3 }
 0x211   : > { %v1018_v39 = vmul.f32 %v948_v38, %v835_v37 }
 0x213   : > { %v640_v40 = vpop.f32.mrf.mxu1  ;;  %v2351_v41 = vadd.f32 %v1018_v39, %v2257_v2 }
 0x214   : > { %v1777_v43 = vpop.eup %1776  ;;  %v641_v44 = vadd.f32 %v640_v40, %v2169_v27 }
 0x215   : > { %1570 = vmatmul.msk.f32.gmra.mxu2 %vm675_vm4, %v1777_v43  ;;  %1603 = vmatmul.msk.f32.gmra.mxu3 %vm675_vm4, %v1777_v43 }
 0x216   : > { %1778 = vtanh.f32 %v641_v44  ;;  %1095 = vmax.xlane.f32.xlu1 %v2351_v41 }
 0x218   : > { %v838_v45 = vpop.f32.mrf.mxu2  ;;  %v951_v46 = vpop.f32.mrf.mxu3 }
 0x219   : > { %v1019_v47 = vmul.f32 %v951_v46, %v838_v45 }
 0x21b   : > { %v2358_v48 = vadd.f32 %v1019_v47, %v2257_v2 }
 0x21c   : > { %v1779_v50 = vpop.eup %1778 }
 0x21d   : > { %1571 = vmatmul.msk.f32.gmra.mxu2 %vm675_vm4, %v1779_v50  ;;  %1604 = vmatmul.msk.f32.gmra.mxu3 %vm675_vm4, %v1779_v50 }
 0x21e   : > { %1097 = vmax.xlane.f32.xlu2 %v2358_v48 }
 0x220   : > { %v954_v27 = vpop.f32.mrf.mxu3  ;;  %v841_v51 = vpop.f32.mrf.mxu2 }
 0x221   : > { %v1070_v52 = vpop.xlane.xlu0 %1069  ;;  %v1020_v53 = vmul.f32 %v954_v27, %v841_v51 }
 0x222   : > { %v1133_v54 = vsub.f32 %v2260_v5, %v1070_v52 }
 0x223   : > { %v2365_v55 = vadd.f32 %v1020_v53, %v2257_v2 }
 0x224   : > { %v1165_v57 = vmul.f32 1.442695, %v1133_v54 }
 0x225   : > { %1099 = vmax.xlane.f32.xlu0 %v2365_v55 }
 0x226   : > { %1780 = vpow2.f32 %v1165_v57 }
 0x228   : > { %v957_v58 = vpop.f32.mrf.mxu3  ;;  %v844_v19 = vpop.f32.mrf.mxu2 }
 0x229   : > { %v1072_v59 = vpop.xlane.xlu0 %1071  ;;  %v1021_v60 = vmul.f32 %v957_v58, %v844_v19 }
 0x22a   : > { %v1134_v61 = vsub.f32 %v2267_v12, %v1072_v59 }
 0x22b   : > { %v2370_v63 = vadd.f32 %v1021_v60, %v2257_v2 }
 0x22c   : > { %v2372_v0 = vpop.eup %1780  ;;  %v1167_v1 = vmul.f32 1.442695, %v1134_v61 }
 0x22d   : > { %1229 = vadd.xlane.f32.xlu2 %v2372_v0  ;;  %1101 = vmax.xlane.f32.xlu1 %v2370_v63 }
 0x22e   : > { %1782 = vpow2.f32 %v1167_v1 }
 0x230   : > { %v960_v5 = vpop.f32.mrf.mxu3  ;;  %v847_v3 = vpop.f32.mrf.mxu2 }
 0x231   : > { %v1074_v4 = vpop.xlane.xlu1 %1073  ;;  %v1022_v6 = vmul.f32 %v960_v5, %v847_v3 }
 0x232   : > { %v1135_v8 = vsub.f32 %v2274_v20, %v1074_v4 }
 0x233   : > { %v2378_v9 = vadd.f32 %v1022_v6, %v2257_v2 }
 0x234   : > { %v2380_v12 = vpop.eup %1782  ;;  %v1169_v10 = vmul.f32 1.442695, %v1135_v8 }
 0x235   : > { %1231 = vadd.xlane.f32.xlu0 %v2380_v12  ;;  %1103 = vmax.xlane.f32.xlu2 %v2378_v9 }
 0x236   : > { %1784 = vpow2.f32 %v1169_v10 }
 0x238   : > { %v963_v11 = vpop.f32.mrf.mxu3  ;;  %v850_v13 = vpop.f32.mrf.mxu2 }
 0x239   : > { %v1076_v14 = vpop.xlane.xlu1 %1075  ;;  %v1023_v16 = vmul.f32 %v963_v11, %v850_v13 }
 0x23a   : > { %v1136_v17 = vsub.f32 %v2281_v28, %v1076_v14 }
 0x23b   : > { %v2386_v18 = vadd.f32 %v1023_v16, %v2257_v2 }
 0x23c   : > { %v2388_v20 = vpop.eup %1784  ;;  %v1171_v21 = vmul.f32 1.442695, %v1136_v17 }
 0x23d   : > { %1233 = vadd.xlane.f32.xlu1 %v2388_v20  ;;  %1105 = vmax.xlane.f32.xlu0 %v2386_v18 }
 0x23e   : > { %1786 = vpow2.f32 %v1171_v21 }
 0x240   : > { %v966_v22 = vpop.f32.mrf.mxu3  ;;  %v853_v23 = vpop.f32.mrf.mxu2 }
 0x241   : > { %v1078_v25 = vpop.xlane.xlu2 %1077  ;;  %v1024_v26 = vmul.f32 %v966_v22, %v853_v23 }
 0x242   : > { %v1137_v29 = vsub.f32 %v2288_v35, %v1078_v25 }
 0x243   : > { %v2394_v30 = vadd.f32 %v1024_v26, %v2257_v2 }
 0x244   : > { %v2396_v28 = vpop.eup %1786  ;;  %v1173_v31 = vmul.f32 1.442695, %v1137_v29 }
 0x245   : > { %1235 = vadd.xlane.f32.xlu2 %v2396_v28  ;;  %1107 = vmax.xlane.f32.xlu1 %v2394_v30 }
 0x246   : > { %1788 = vpow2.f32 %v1173_v31 }
 0x248   : > { %v969_v32 = vpop.f32.mrf.mxu3  ;;  %v856_v34 = vpop.f32.mrf.mxu2 }
 0x249   : > { %v1080_v36 = vpop.xlane.xlu2 %1079  ;;  %v1025_v37 = vmul.f32 %v969_v32, %v856_v34 }
 0x24a   : > { %v1138_v38 = vsub.f32 %v2295_v42, %v1080_v36 }
 0x24b   : > { %v2402_v39 = vadd.f32 %v1025_v37, %v2257_v2 }
 0x24c   : > { %v2404_v35 = vpop.eup %1788  ;;  %v1175_v40 = vmul.f32 1.442695, %v1138_v38 }
 0x24d   : > { %1237 = vadd.xlane.f32.xlu0 %v2404_v35  ;;  %1109 = vmax.xlane.f32.xlu2 %v2402_v39 }
 0x24e   : > { %1790 = vpow2.f32 %v1175_v40 }
 0x250   : > { %v972_v43 = vpop.f32.mrf.mxu3  ;;  %v859_v44 = vpop.f32.mrf.mxu2 }
 0x251   : > { %v1082_v45 = vpop.xlane.xlu0 %1081  ;;  %v1026_v46 = vmul.f32 %v972_v43, %v859_v44 }
 0x252   : > { %v1139_v47 = vsub.f32 %v2302_v49, %v1082_v45 }
 0x253   : > { %v2410_v50 = vadd.f32 %v1026_v46, %v2257_v2 }
 0x254   : > { %v2412_v42 = vpop.eup %1790  ;;  %v1177_v27 = vmul.f32 1.442695, %v1139_v47 }
 0x255   : > { %1239 = vadd.xlane.f32.xlu1 %v2412_v42  ;;  %1111 = vmax.xlane.f32.xlu0 %v2410_v50 }
 0x256   : > { %1792 = vpow2.f32 %v1177_v27 }
 0x258   : > { %v975_v51 = vpop.f32.mrf.mxu3  ;;  %v862_v52 = vpop.f32.mrf.mxu2 }
 0x259   : > { %v1084_v53 = vpop.xlane.xlu1 %1083  ;;  %v1027_v54 = vmul.f32 %v975_v51, %v862_v52 }
 0x25a   : > { %v1140_v57 = vsub.f32 %v2309_v56, %v1084_v53 }
 0x25b   : > { %v2418_v58 = vadd.f32 %v1027_v54, %v2257_v2 }
 0x25c   : > { %v2420_v49 = vpop.eup %1792  ;;  %v1179_v19 = vmul.f32 1.442695, %v1140_v57 }
 0x25d   : > { %1241 = vadd.xlane.f32.xlu2 %v2420_v49  ;;  %1113 = vmax.xlane.f32.xlu1 %v2418_v58 }
 0x25e   : > { %1794 = vpow2.f32 %v1179_v19 }
 0x260   : > { %v978_v59 = vpop.f32.mrf.mxu3  ;;  %v865_v60 = vpop.f32.mrf.mxu2 }
 0x261   : > { %v1086_v61 = vpop.xlane.xlu2 %1085  ;;  %v1028_v1 = vmul.f32 %v978_v59, %v865_v60 }
 0x262   : > { %v1141_v5 = vsub.f32 %v2316_v62, %v1086_v61 }
 0x263   : > { %v2426_v3 = vadd.f32 %v1028_v1, %v2257_v2 }
 0x264   : > { %v2428_v56 = vpop.eup %1794  ;;  %v1181_v4 = vmul.f32 1.442695, %v1141_v5 }
 0x265   : > { %1243 = vadd.xlane.f32.xlu0 %v2428_v56  ;;  %1115 = vmax.xlane.f32.xlu2 %v2426_v3 }
 0x266   : > { %1796 = vpow2.f32 %v1181_v4 }
 0x268   : > { %v981_v6 = vpop.f32.mrf.mxu3  ;;  %v868_v8 = vpop.f32.mrf.mxu2 }
 0x269   : > { %v1088_v10 = vpop.xlane.xlu0 %1087  ;;  %v1029_v11 = vmul.f32 %v981_v6, %v868_v8 }
 0x26a   : > { %v1142_v13 = vsub.f32 %v2323_v7, %v1088_v10 }
 0x26b   : > { %v2434_v14 = vadd.f32 %v1029_v11, %v2257_v2 }
 0x26c   : > { %v2436_v62 = vpop.eup %1796  ;;  %v1183_v16 = vmul.f32 1.442695, %v1142_v13 }
 0x26d   : > { %1245 = vadd.xlane.f32.xlu1 %v2436_v62  ;;  %1117 = vmax.xlane.f32.xlu0 %v2434_v14 }
 0x26e   : > { %1798 = vpow2.f32 %v1183_v16 }
 0x270   : > { %v984_v17 = vpop.f32.mrf.mxu3  ;;  %v871_v21 = vpop.f32.mrf.mxu2 }
 0x271   : > { %v1090_v22 = vpop.xlane.xlu1 %1089  ;;  %v1030_v23 = vmul.f32 %v984_v17, %v871_v21 }
 0x272   : > { %v1143_v25 = vsub.f32 %v2330_v15, %v1090_v22 }
 0x273   : > { %v2442_v26 = vadd.f32 %v1030_v23, %v2257_v2 }
 0x274   : > { %v2444_v7 = vpop.eup %1798  ;;  %v1185_v29 = vmul.f32 1.442695, %v1143_v25 }
 0x275   : > { %1247 = vadd.xlane.f32.xlu2 %v2444_v7  ;;  %1119 = vmax.xlane.f32.xlu1 %v2442_v26 }
 0x276   : > { %1800 = vpow2.f32 %v1185_v29 }
 0x278   : > { %v987_v31 = vpop.f32.mrf.mxu3  ;;  %v874_v32 = vpop.f32.mrf.mxu2 }
 0x279   : > { %v1031_v34 = vmul.f32 %v987_v31, %v874_v32  ;;  %v1092_v52 = vpop.xlane.xlu2 %1091 }
 0x27b   : > { %v2449_v36 = vadd.f32 %v1031_v34, %v2257_v2 }
 0x27c   : > { %v2451_v37 = vpop.eup %1800 }
 0x27d   : > { %1249 = vadd.xlane.f32.xlu0 %v2451_v37  ;;  %1121 = vmax.xlane.f32.xlu2 %v2449_v36 }
 0x280   : > { %v990_v15 = vpop.f32.mrf.mxu3  ;;  %v877_v38 = vpop.f32.mrf.mxu2 }
 0x281   : > { %v1032_v40 = vmul.f32 %v990_v15, %v877_v38  ;;  %v1094_v47 = vpop.xlane.xlu0 %1093 }
 0x282   : > { %v1145_v51 = vsub.f32 %v2344_v33, %v1094_v47 }
 0x283   : > { %v2456_v43 = vadd.f32 %v1032_v40, %v2257_v2 }
 0x284   : > { %v1189_v19 = vmul.f32 1.442695, %v1145_v51 }
 0x285   : > { %1123 = vmax.xlane.f32.xlu0 %v2456_v43 }
 0x286   : > { %1802 = vpow2.f32 %v1189_v19 }
 0x288   : > { %v993_v44 = vpop.f32.mrf.mxu3  ;;  %v880_v45 = vpop.f32.mrf.mxu2 }
 0x289   : > { %v1033_v46 = vmul.f32 %v993_v44, %v880_v45  ;;  %v1096_v60 = vpop.xlane.xlu1 %1095 }
 0x28a   : > { %v1146_v61 = vsub.f32 %v2351_v41, %v1096_v60  ;;  %v1144_v41 = vsub.f32 %v2337_v24, %v1092_v52 }
 0x28b   : > { %v2460_v27 = vadd.f32 %v1033_v46, %v2257_v2 }
 0x28c   : > { %v1191_v10 = vmul.f32 1.442695, %v1146_v61  ;;  %v2470_v13 = vpop.eup %1802  ;;  %v1187_v31 = vmul.f32 1.442695, %v1144_v41 }
 0x28d   : > { %1125 = vmax.xlane.f32.xlu1 %v2460_v27 }
 0x290   : > { %v996_v53 = vpop.f32.mrf.mxu3  ;;  %v883_v54 = vpop.f32.mrf.mxu2 }
 0x291   : > { %v1034_v57 = vmul.f32 %v996_v53, %v883_v54  ;;  %v1098_v1 = vpop.xlane.xlu2 %1097 }
 0x292   : > { %v1147_v15 = vsub.f32 %v2358_v48, %v1098_v1 }
 0x293   : > { %v2465_v59 = vadd.f32 %v1034_v57, %v2257_v2 }
 0x295   : > { %1127 = vmax.xlane.f32.xlu2 %v2465_v59 }
 0x298   : > { %v999_v5 = vpop.f32.mrf.mxu3  ;;  %v1100_v4 = vpop.xlane.xlu0 %1099 }
 0x299   : > { %v1148_v33 = vsub.f32 %v2365_v55, %v1100_v4  ;;  %v886_v6 = vpop.f32.mrf.mxu2 }
 0x29a   : > { %v1035_v8 = vmul.f32 %v999_v5, %v886_v6 }
 0x29b   : > { %v1195_v11 = vmul.f32 1.442695, %v1148_v33 }
 0x29c   : > { %v2473_v16 = vadd.f32 %v1035_v8, %v2257_v2 }
 0x29d   : > { %1804 = vpow2.f32 %v1195_v11  ;;  %1253 = vadd.xlane.f32.xlu2 %v2470_v13 }
 0x29e   : > { %1129 = vmax.xlane.f32.xlu0 %v2473_v16  ;;  %1806 = vpow2.f32 %v1191_v10 }
 0x2a0   : > { %v1230_v17 = vpop.xlane.xlu2 %1229  ;;  %v1002_v55 = vpop.f32.mrf.mxu3 }
 0x2a1   : > { %1808 = vrcp.f32 %v1230_v17  ;;  %v1102_v21 = vpop.xlane.xlu1 %1101  ;;  %v889_v22 = vpop.f32.mrf.mxu2 }
 0x2a2   : > { %v1149_v23 = vsub.f32 %v2370_v63, %v1102_v21  ;;  %v1036_v25 = vmul.f32 %v1002_v55, %v889_v22 }
 0x2a3   : > { %v2480_v29 = vpop.eup %1804 }
 0x2a4   : > { %v1197_v32 = vmul.f32 1.442695, %v1149_v23  ;;  %v2485_v34 = vadd.f32 %v1036_v25, %v2257_v2  ;;  %v2487_v24 = vpop.eup %1806  ;;  %v1193_v2 = vmul.f32 1.442695, %v1147_v15 }
 0x2a5   : > { %1259 = vadd.xlane.f32.xlu2 %v2480_v29 }
 0x2a6   : > { %1810 = vpow2.f32 %v1197_v32  ;;  %1255 = vadd.xlane.f32.xlu0 %v2487_v24  ;;  %1131 = vmax.xlane.f32.xlu1 %v2485_v34 }
 0x2a7   : > { %v1809_v63 = vpop.eup %1808  ;;  %1812 = vpow2.f32 %v1187_v31 }
 0x2a8   : > { %v1325_v38 = vmul.f32 %v1809_v63, %v2372_v0  ;;  %v1232_v40 = vpop.xlane.xlu0 %1231  ;;  %v1104_v45 = vpop.xlane.xlu2 %1103 }
 0x2a9   : > { %1814 = vrcp.f32 %v1232_v40  ;;  %v1150_v0 = vsub.f32 %v2378_v9, %v1104_v45 }
 0x2aa   : > { %1357 = vst [vmem:[%s2494_s29] sm:$0xff] %v1325_v38  ;;  %1816 = vpow2.f32 %v1193_v2 }
 0x2ab   : > { %v1199_v54 = vmul.f32 1.442695, %v1150_v0 }
 0x2ac   : > { %v2497_v44 = vpop.eup %1810 }
 0x2ad   : > { %v2499_v46 = vpop.eup %1812 }
 0x2ae   : > { %1261 = vadd.xlane.f32.xlu0 %v2497_v44  ;;  %1251 = vadd.xlane.f32.xlu1 %v2499_v46 }
 0x2af   : > { %v1815_v48 = vpop.eup %1814 }
 0x2b0   : > { %v1326_v47 = vmul.f32 %v1815_v48, %v2380_v12  ;;  %v1234_v51 = vpop.xlane.xlu1 %1233  ;;  %v1106_v52 = vpop.xlane.xlu0 %1105 }
 0x2b1   : > { %1818 = vrcp.f32 %v1234_v51  ;;  %v1151_v53 = vsub.f32 %v2386_v18, %v1106_v52  ;;  %v2507_v19 = vpop.eup %1816 }
 0x2b2   : > { %1358 = vst [vmem:[%s2494_s29 + $0x8] sm:$0xff] %v1326_v47 }
 0x2b3   : > { %v1201_v57 = vmul.f32 1.442695, %v1151_v53 }
 0x2b5   : > { %1820 = vpow2.f32 %v1201_v57 }
 0x2b6   : > { %1257 = vadd.xlane.f32.xlu1 %v2507_v19  ;;  %1822 = vpow2.f32 %v1199_v54 }
 0x2b7   : > { %v1819_v60 = vpop.eup %1818 }
 0x2b8   : > { %v1327_v9 = vmul.f32 %v1819_v60, %v2388_v20  ;;  %v1236_v61 = vpop.xlane.xlu2 %1235  ;;  %v1108_v12 = vpop.xlane.xlu1 %1107 }
 0x2b9   : > { %1824 = vrcp.f32 %v1236_v61  ;;  %v1152_v1 = vsub.f32 %v2394_v30, %v1108_v12 }
 0x2ba   : > { %1359 = vst [vmem:[%s2494_s29 + $0x10] sm:$0xff] %v1327_v9 }
 0x2bb   : > { %v2513_v18 = vpop.eup %1820  ;;  %v1203_v5 = vmul.f32 1.442695, %v1152_v1 }
 0x2bc   : > { %1265 = vadd.xlane.f32.xlu2 %v2513_v18  ;;  %v2516_v4 = vpop.eup %1822 }
 0x2bd   : > { %1826 = vpow2.f32 %v1203_v5 }
 0x2be   : > { %1263 = vadd.xlane.f32.xlu1 %v2516_v4 }
 0x2bf   : > { %v1825_v33 = vpop.eup %1824 }
 0x2c0   : > { %v1328_v20 = vmul.f32 %v1825_v33, %v2396_v28  ;;  %v1238_v6 = vpop.xlane.xlu0 %1237  ;;  %v1110_v8 = vpop.xlane.xlu2 %1109 }
 0x2c1   : > { %1828 = vrcp.f32 %v1238_v6  ;;  %v1153_v30 = vsub.f32 %v2402_v39, %v1110_v8 }
 0x2c2   : > { %1360 = vst [vmem:[%s2494_s29 + $0x18] sm:$0xff] %v1328_v20 }
 0x2c3   : > { %v2522_v10 = vpop.eup %1826  ;;  %v1205_v11 = vmul.f32 1.442695, %v1153_v30 }
 0x2c4   : > { %1267 = vadd.xlane.f32.xlu0 %v2522_v10 }
 0x2c5   : > { %1830 = vpow2.f32 %v1205_v11 }
 0x2c7   : > { %v1829_v41 = vpop.eup %1828 }
 0x2c8   : > { %v1329_v17 = vmul.f32 %v1829_v41, %v2404_v35  ;;  %v1240_v55 = vpop.xlane.xlu1 %1239  ;;  %v1112_v21 = vpop.xlane.xlu0 %1111 }
 0x2c9   : > { %1832 = vrcp.f32 %v1240_v55  ;;  %v1154_v28 = vsub.f32 %v2410_v50, %v1112_v21 }
 0x2ca   : > { %1361 = vst [vmem:[%s2494_s29 + $0x20] sm:$0xff] %v1329_v17 }
 0x2cb   : > { %v2528_v22 = vpop.eup %1830  ;;  %v1207_v39 = vmul.f32 1.442695, %v1154_v28 }
 0x2cc   : > { %1269 = vadd.xlane.f32.xlu1 %v2528_v22 }
 0x2cd   : > { %1834 = vpow2.f32 %v1207_v39 }
 0x2cf   : > { %v1833_v23 = vpop.eup %1832 }
 0x2d0   : > { %v1330_v25 = vmul.f32 %v1833_v23, %v2412_v42  ;;  %v1242_v31 = vpop.xlane.xlu2 %1241  ;;  %v1114_v32 = vpop.xlane.xlu1 %1113 }
 0x2d1   : > { %1836 = vrcp.f32 %v1242_v31  ;;  %v1155_v35 = vsub.f32 %v2418_v58, %v1114_v32 }
 0x2d2   : > { %1362 = vst [vmem:[%s2494_s29 + $0x28] sm:$0xff] %v1330_v25 }
 0x2d3   : > { %v2534_v63 = vpop.eup %1834  ;;  %v1209_v50 = vmul.f32 1.442695, %v1155_v35 }
 0x2d4   : > { %1271 = vadd.xlane.f32.xlu2 %v2534_v63 }
 0x2d5   : > { %1838 = vpow2.f32 %v1209_v50 }
 0x2d7   : > { %v1837_v15 = vpop.eup %1836 }
 0x2d8   : > { %v1331_v38 = vmul.f32 %v1837_v15, %v2420_v49  ;;  %v1244_v40 = vpop.xlane.xlu0 %1243  ;;  %v1116_v2 = vpop.xlane.xlu2 %1115 }
 0x2d9   : > { %1840 = vrcp.f32 %v1244_v40  ;;  %v1156_v42 = vsub.f32 %v2426_v3, %v1116_v2 }
 0x2da   : > { %1363 = vst [vmem:[%s2494_s29 + $0x30] sm:$0xff] %v1331_v38 }
 0x2db   : > { %v2540_v45 = vpop.eup %1838  ;;  %v1211_v58 = vmul.f32 1.442695, %v1156_v42 }
 0x2dc   : > { %1273 = vadd.xlane.f32.xlu0 %v2540_v45 }
 0x2dd   : > { %1842 = vpow2.f32 %v1211_v58 }
 0x2df   : > { %v1841_v48 = vpop.eup %1840 }
 0x2e0   : > { %v1332_v0 = vmul.f32 %v1841_v48, %v2428_v56  ;;  %v1246_v47 = vpop.xlane.xlu1 %1245  ;;  %v1118_v51 = vpop.xlane.xlu0 %1117 }
 0x2e1   : > { %1844 = vrcp.f32 %v1246_v47  ;;  %v1157_v49 = vsub.f32 %v2434_v14, %v1118_v51 }
 0x2e2   : > { %1364 = vst [vmem:[%s2494_s29 + $0x38] sm:$0xff] %v1332_v0 }
 0x2e3   : > { %v2546_v52 = vpop.eup %1842  ;;  %v1213_v3 = vmul.f32 1.442695, %v1157_v49 }
 0x2e4   : > { %1275 = vadd.xlane.f32.xlu1 %v2546_v52 }
 0x2e5   : > { %1846 = vpow2.f32 %v1213_v3 }
 0x2e7   : > { %v1845_v53 = vpop.eup %1844 }
 0x2e8   : > { %v1333_v54 = vmul.f32 %v1845_v53, %v2436_v62  ;;  %v1248_v57 = vpop.xlane.xlu2 %1247  ;;  %v1120_v60 = vpop.xlane.xlu1 %1119 }
 0x2e9   : > { %1848 = vrcp.f32 %v1248_v57  ;;  %v1158_v56 = vsub.f32 %v2442_v26, %v1120_v60 }
 0x2ea   : > { %1365 = vst [vmem:[%s2494_s29 + $0x40] sm:$0xff] %v1333_v54 }
 0x2eb   : > { %v2552_v9 = vpop.eup %1846  ;;  %v1215_v14 = vmul.f32 1.442695, %v1158_v56 }
 0x2ec   : > { %1277 = vadd.xlane.f32.xlu2 %v2552_v9 }
 0x2ed   : > { %1850 = vpow2.f32 %v1215_v14 }
 0x2ef   : > { %v1849_v61 = vpop.eup %1848 }
 0x2f0   : > { %v1334_v12 = vmul.f32 %v1849_v61, %v2444_v7  ;;  %v1250_v1 = vpop.xlane.xlu0 %1249  ;;  %v1122_v5 = vpop.xlane.xlu2 %1121 }
 0x2f1   : > { %1852 = vrcp.f32 %v1250_v1  ;;  %v1159_v62 = vsub.f32 %v2449_v36, %v1122_v5 }
 0x2f2   : > { %1366 = vst [vmem:[%s2494_s29 + $0x48] sm:$0xff] %v1334_v12 }
 0x2f3   : > { %v2558_v33 = vpop.eup %1850  ;;  %v1217_v26 = vmul.f32 1.442695, %v1159_v62 }
 0x2f4   : > { %1279 = vadd.xlane.f32.xlu0 %v2558_v33 }
 0x2f5   : > { %1854 = vpow2.f32 %v1217_v26 }
 0x2f7   : > { %v1853_v20 = vpop.eup %1852 }
 0x2f8   : > { %v1335_v6 = vmul.f32 %v1853_v20, %v2451_v37  ;;  %v1124_v8 = vpop.xlane.xlu0 %1123 }
 0x2f9   : > { %v1160_v30 = vsub.f32 %v2456_v43, %v1124_v8 }
 0x2fa   : > { %1367 = vst [vmem:[%s2494_s29 + $0x50] sm:$0xff] %v1335_v6 }
 0x2fb   : > { %v2564_v7 = vpop.eup %1854  ;;  %v1219_v11 = vmul.f32 1.442695, %v1160_v30 }
 0x2fc   : > { %1281 = vadd.xlane.f32.xlu1 %v2564_v7 }
 0x2fd   : > { %1856 = vpow2.f32 %v1219_v11 }
 0x300   : > { %v1126_v36 = vpop.xlane.xlu1 %1125 }
 0x301   : > { %v1161_v41 = vsub.f32 %v2460_v27, %v1126_v36 }
 0x303   : > { %v2568_v17 = vpop.eup %1856  ;;  %v1221_v55 = vmul.f32 1.442695, %v1161_v41 }
 0x304   : > { %1283 = vadd.xlane.f32.xlu2 %v2568_v17 }
 0x305   : > { %1858 = vpow2.f32 %v1221_v55 }
 0x308   : > { %v1128_v37 = vpop.xlane.xlu2 %1127 }
 0x309   : > { %v1162_v21 = vsub.f32 %v2465_v59, %v1128_v37 }
 0x30b   : > { %v2572_v43 = vpop.eup %1858  ;;  %v1223_v28 = vmul.f32 1.442695, %v1162_v21 }
 0x30c   : > { %1285 = vadd.xlane.f32.xlu0 %v2572_v43 }
 0x30d   : > { %1860 = vpow2.f32 %v1223_v28 }
 0x310   : > { %v1254_v39 = vpop.xlane.xlu2 %1253 }
 0x311   : > { %1862 = vrcp.f32 %v1254_v39  ;;  %v1130_v23 = vpop.xlane.xlu0 %1129 }
 0x312   : > { %v1163_v27 = vsub.f32 %v2473_v16, %v1130_v23 }
 0x313   : > { %v2576_v25 = vpop.eup %1860 }
 0x314   : > { %v1225_v31 = vmul.f32 1.442695, %v1163_v27  ;;  %1287 = vadd.xlane.f32.xlu1 %v2576_v25 }
 0x316   : > { %1864 = vpow2.f32 %v1225_v31 }
 0x317   : > { %v1863_v32 = vpop.eup %1862 }
 0x318   : > { %v1337_v59 = vmul.f32 %v1863_v32, %v2470_v13  ;;  %v1260_v35 = vpop.xlane.xlu2 %1259 }
 0x319   : > { %1866 = vrcp.f32 %v1260_v35  ;;  %v1256_v50 = vpop.xlane.xlu0 %1255  ;;  %v1132_v15 = vpop.xlane.xlu1 %1131 }
 0x31a   : > { %1369 = vst [vmem:[%s2494_s29 + $0x60] sm:$0xff] %v1337_v59  ;;  %1868 = vrcp.f32 %v1256_v50  ;;  %v1164_v38 = vsub.f32 %v2485_v34, %v1132_v15 }
 0x31c   : > { %v2582_v16 = vpop.eup %1864  ;;  %v1227_v40 = vmul.f32 1.442695, %v1164_v38 }
 0x31d   : > { %1289 = vadd.xlane.f32.xlu2 %v2582_v16 }
 0x31e   : > { %1870 = vpow2.f32 %v1227_v40 }
 0x31f   : > { %v1867_v2 = vpop.eup %1866 }
 0x320   : > { %v1869_v42 = vpop.eup %1868  ;;  %v1340_v13 = vmul.f32 %v1867_v2, %v2480_v29 }
 0x321   : > { %v1338_v58 = vmul.f32 %v1869_v42, %v2487_v24  ;;  %v1262_v48 = vpop.xlane.xlu0 %1261  ;;  %v1252_v0 = vpop.xlane.xlu1 %1251 }
 0x322   : > { %1372 = vst [vmem:[%s2494_s29 + $0x78] sm:$0xff] %v1340_v13  ;;  %1872 = vrcp.f32 %v1262_v48 }
 0x323   : > { %1370 = vst [vmem:[%s2494_s29 + $0x68] sm:$0xff] %v1338_v58  ;;  %1874 = vrcp.f32 %v1252_v0 }
 0x324   : > { %v2589_v34 = vpop.eup %1870 }
 0x325   : > { %1291 = vadd.xlane.f32.xlu0 %v2589_v34 }
 0x328   : > { %v1873_v47 = vpop.eup %1872 }
 0x329   : > { %v1875_v51 = vpop.eup %1874  ;;  %v1341_v49 = vmul.f32 %v1873_v47, %v2497_v44  ;;  %v1258_v29 = vpop.xlane.xlu1 %1257 }
 0x32a   : > { %v1336_v3 = vmul.f32 %v1875_v51, %v2499_v46  ;;  %1876 = vrcp.f32 %v1258_v29 }
 0x32b   : > { %1373 = vst [vmem:[%s2494_s29 + $0x80] sm:$0xff] %v1341_v49 }
 0x32c   : > { %1368 = vst [vmem:[%s2494_s29 + $0x58] sm:$0xff] %v1336_v3 }
 0x32f   : > { %v1266_v24 = vpop.xlane.xlu2 %1265 }
 0x330   : > { %v1877_v53 = vpop.eup %1876  ;;  %1878 = vrcp.f32 %v1266_v24 }
 0x331   : > { %v1339_v54 = vmul.f32 %v1877_v53, %v2507_v19  ;;  %v1264_v57 = vpop.xlane.xlu1 %1263 }
 0x332   : > { %1880 = vrcp.f32 %v1264_v57 }
 0x333   : > { %1371 = vst [vmem:[%s2494_s29 + $0x70] sm:$0xff] %v1339_v54 }
 0x336   : > { %v1879_v60 = vpop.eup %1878 }
 0x337   : > { %v1343_v44 = vmul.f32 %v1879_v60, %v2513_v18  ;;  %v1268_v56 = vpop.xlane.xlu0 %1267 }
 0x338   : > { %v1881_v46 = vpop.eup %1880  ;;  %1882 = vrcp.f32 %v1268_v56 }
 0x339   : > { %1375 = vst [vmem:[%s2494_s29 + $0x90] sm:$0xff] %v1343_v44  ;;  %v1342_v14 = vmul.f32 %v1881_v46, %v2516_v4 }
 0x33b   : > { %1374 = vst [vmem:[%s2494_s29 + $0x88] sm:$0xff] %v1342_v14 }
 0x33e   : > { %v1883_v61 = vpop.eup %1882 }
 0x33f   : > { %v1344_v12 = vmul.f32 %v1883_v61, %v2522_v10  ;;  %v1270_v19 = vpop.xlane.xlu1 %1269 }
 0x340   : > { %1884 = vrcp.f32 %v1270_v19 }
 0x341   : > { %1376 = vst [vmem:[%s2494_s29 + $0x98] sm:$0xff] %v1344_v12 }
 0x346   : > { %v1885_v1 = vpop.eup %1884 }
 0x347   : > { %v1345_v5 = vmul.f32 %v1885_v1, %v2528_v22  ;;  %v1272_v18 = vpop.xlane.xlu2 %1271 }
 0x348   : > { %1886 = vrcp.f32 %v1272_v18 }
 0x349   : > { %1377 = vst [vmem:[%s2494_s29 + $0xa0] sm:$0xff] %v1345_v5 }
 0x34e   : > { %v1887_v62 = vpop.eup %1886 }
 0x34f   : > { %v1346_v26 = vmul.f32 %v1887_v62, %v2534_v63  ;;  %v1274_v4 = vpop.xlane.xlu0 %1273 }
 0x350   : > { %1888 = vrcp.f32 %v1274_v4 }
 0x351   : > { %1378 = vst [vmem:[%s2494_s29 + $0xa8] sm:$0xff] %v1346_v26 }
 0x356   : > { %v1889_v20 = vpop.eup %1888 }
 0x357   : > { %v1347_v10 = vmul.f32 %v1889_v20, %v2540_v45  ;;  %v1276_v6 = vpop.xlane.xlu1 %1275 }
 0x358   : > { %1890 = vrcp.f32 %v1276_v6 }
 0x359   : > { %1379 = vst [vmem:[%s2494_s29 + $0xb0] sm:$0xff] %v1347_v10 }
 0x35e   : > { %v1891_v8 = vpop.eup %1890 }
 0x35f   : > { %v1348_v22 = vmul.f32 %v1891_v8, %v2546_v52  ;;  %v1278_v30 = vpop.xlane.xlu2 %1277 }
 0x360   : > { %1892 = vrcp.f32 %v1278_v30 }
 0x361   : > { %1380 = vst [vmem:[%s2494_s29 + $0xb8] sm:$0xff] %v1348_v22 }
 0x366   : > { %v1893_v11 = vpop.eup %1892 }
 0x367   : > { %v1349_v63 = vmul.f32 %v1893_v11, %v2552_v9  ;;  %v1280_v36 = vpop.xlane.xlu0 %1279 }
 0x368   : > { %1894 = vrcp.f32 %v1280_v36 }
 0x369   : > { %1381 = vst [vmem:[%s2494_s29 + $0xc0] sm:$0xff] %v1349_v63 }
 0x36e   : > { %v1895_v41 = vpop.eup %1894 }
 0x36f   : > { %v1350_v45 = vmul.f32 %v1895_v41, %v2558_v33  ;;  %v1282_v55 = vpop.xlane.xlu1 %1281 }
 0x370   : > { %1896 = vrcp.f32 %v1282_v55 }
 0x371   : > { %1382 = vst [vmem:[%s2494_s29 + $0xc8] sm:$0xff] %v1350_v45 }
 0x376   : > { %v1897_v37 = vpop.eup %1896 }
 0x377   : > { %v1351_v52 = vmul.f32 %v1897_v37, %v2564_v7  ;;  %v1284_v21 = vpop.xlane.xlu2 %1283 }
 0x378   : > { %1898 = vrcp.f32 %v1284_v21 }
 0x379   : > { %1383 = vst [vmem:[%s2494_s29 + $0xd0] sm:$0xff] %v1351_v52 }
 0x37e   : > { %v1899_v9 = vpop.eup %1898 }
 0x37f   : > { %v1352_v28 = vmul.f32 %v1899_v9, %v2568_v17  ;;  %v1286_v39 = vpop.xlane.xlu0 %1285 }
 0x380   : > { %1900 = vrcp.f32 %v1286_v39 }
 0x381   : > { %1384 = vst [vmem:[%s2494_s29 + $0xd8] sm:$0xff] %v1352_v28 }
 0x386   : > { %v1901_v23 = vpop.eup %1900 }
 0x387   : > { %v1353_v33 = vmul.f32 %v1901_v23, %v2572_v43  ;;  %v1288_v27 = vpop.xlane.xlu1 %1287 }
 0x388   : > { %1902 = vrcp.f32 %v1288_v27 }
 0x389   : > { %1385 = vst [vmem:[%s2494_s29 + $0xe0] sm:$0xff] %v1353_v33 }
 0x38e   : > { %v1903_v7 = vpop.eup %1902 }
 0x38f   : > { %v1354_v31 = vmul.f32 %v1903_v7, %v2576_v25 }
 0x390   : > { %v1290_v32 = vpop.xlane.xlu2 %1289 }
 0x391   : > { %1386 = vst [vmem:[%s2494_s29 + $0xe8] sm:$0xff] %v1354_v31  ;;  %1904 = vrcp.f32 %v1290_v32 }
 0x397   : > { %v1905_v17 = vpop.eup %1904 }
 0x398   : > { %v1355_v59 = vmul.f32 %v1905_v17, %v2582_v16  ;;  %v1292_v35 = vpop.xlane.xlu0 %1291 }
 0x399   : > { %1906 = vrcp.f32 %v1292_v35 }
 0x39a   : > { %1387 = vst [vmem:[%s2494_s29 + $0xf0] sm:$0xff] %v1355_v59 }
 0x39f   : > { %v1907_v43 = vpop.eup %1906 }
 0x3a0   : > { %v1356_v25 = vmul.f32 %v1907_v43, %v2589_v34 }
 0x3a2   : > { %1388 = vst [vmem:[%s2494_s29 + $0xf8] sm:$0xff] %v1356_v25 }
 0x3a3   : > { %1935 = shalt.err (!%p1932_p3)
}
 0x3a4   : > { %s1972_s24 = smov 128   ;;  %s1973_s25 = smov 8  }
 0x3a5   : > { %1611 = dma.vmem_to_hbm [thread:$0]  (%p2027_p5), %s1403_s6, 4096, %s1405_s7, %s1390_s13, %s1972_s24, %s1972_s24, %s1973_s25  }
 0x3a6 PF: > { %p1617_p4 = scmp.ge.s32.totalorder %s1970_s12, 2  ;;  %s1419_s26 = sand.u32 1, %s1958_s9  }
 0x3a7   : > { %s1420_s27 = scalar_lea.sflag [#allocation3], %s1419_s26 }
 0x3a8   : > { %p1614_p7 = pnand %p1617_p4, %p2031_p6 }
 0x3aa   : > { %p1615_p8 = pneg %p1614_p7 }
 0x3ac   : > { %1953 = dma.done.wait (%p1615_p8), %s1420_s27, 4096  }
 0x3ad   : > { %1955 = vsyncadd (%p1615_p8), %s1420_s27, 4294963200  ;;  %p12_p9 = scmp.ge.s32.totalorder %s2014_s15, 4   ;;  %s2667_s9 = smov %s1962_s10 }
 0x3ae   : > { %s2668_s10 = smov %s1966_s11  ;;  %s2669_s11 = smov %s2025_s18 }
 0x3af   : > { %s2670_s12 = smov %s2014_s15  ;;  %14 = sbr.rel (!%p12_p9) target bundleno = 3 (0x3), region = 63 }
 0x3b4   :  { %1426 = vsyncpa [#allocation3], 1 }
 0x3b5   :  { %1428 = vsyncpa [#allocation3 + $0x1], 1 }

</bundles_post_ra>
